<compile_context>
chip_gen: v5e
topology: v5e:2x2
jax: 0.10.0
libtpu: 0.0.40
codegen_flags: <defaults>
</compile_context>

<pallas_src>
import math

import jax
import jax.numpy as jnp
from jax.experimental import pallas as pl
from jax.experimental.pallas import tpu as pltpu

AGG_N = 7    # len(AGG)
OP_N = 7     # len(OP)
CONN_N = 3
D_SEL = 256  # dense1 / dense2 width


def _full_spec(arr):
    nd = arr.ndim
    return pl.BlockSpec(arr.shape, lambda b, _nd=nd: (0,) * _nd)


# ----------------------------------------------------------------------------
# Fused kernel: synthetic BERT-like encoder (one layer) + all heads, grid = batch
# ----------------------------------------------------------------------------
def fused_kernel(emb_ref, mask_ref, h_ref, hm_ref,
                 wq_ref, bq_ref, wk_ref, bk_ref, wv_ref, bv_ref, wo_ref, bo_ref,
                 g1_ref, be1_ref, wf1_ref, bf1_ref, wf2_ref, bf2_ref,
                 g2_ref, be2_ref,
                 wxh_ref, bxh_ref, whh_ref, bhh_ref, wd3_ref, bd3_ref,
                 psel_ref, pconn_ref, pcop_ref, pcsel_ref):
    f32, bf16 = jnp.float32, jnp.bfloat16
    x0 = emb_ref[0]          # (L, H) f32
    m = mask_ref[0, 0]       # (L,)  f32
    hh = h_ref[0, 0]         # (C,)  int32
    hm = hm_ref[0, 0]        # (C,)  f32
    L, H = x0.shape
    C = hh.shape[0]

    def mm(a, w_ref):        # bf16 MXU matmul, f32 accumulation
        return jnp.dot(a.astype(bf16), w_ref[...], preferred_element_type=f32)

    def layernorm(y, g, b):
        mu = jnp.mean(y, axis=-1, keepdims=True)
        var = jnp.mean((y - mu) ** 2, axis=-1, keepdims=True)
        return (y - mu) * jax.lax.rsqrt(var + 1e-12) * g + b

    # ---------------- synthetic single-layer encoder ----------------
    q = mm(x0, wq_ref) + bq_ref[0]
    k = mm(x0, wk_ref) + bk_ref[0]
    v = mm(x0, wv_ref) + bv_ref[0]

    scores = jax.lax.dot_general(q.astype(bf16), k.astype(bf16),
                                 (((1,), (1,)), ((), ())),
                                 preferred_element_type=f32)
    scores = scores * (1.0 / math.sqrt(H)) + (m[None, :] - 1.0) * 1e9   # mask in f32
    # manual softmax: exp + EUP reciprocal instead of a VPU divide
    smax = jnp.max(scores, axis=-1, keepdims=True)
    e = jnp.exp(scores - smax)
    p = e * pl.reciprocal(jnp.sum(e, axis=-1, keepdims=True), approx=True)

    attn = jnp.dot(p.astype(bf16), v.astype(bf16), preferred_element_type=f32)
    attn = mm(attn, wo_ref) + bo_ref[0]

    x1 = layernorm(x0 + attn, g1_ref[0], be1_ref[0])
    ff = jax.nn.gelu(mm(x1, wf1_ref) + bf1_ref[0], approximate=True)
    ff = mm(ff, wf2_ref) + bf2_ref[0]
    x = layernorm(x1 + ff, g2_ref[0], be2_ref[0])        # last_hidden_state (L, H)

    # ---------------- heads ----------------
    xb = x.astype(bf16)

    # x4h = torch.gather(x, 1, h...)  -> one-hot matmul on the MXU (bf16)
    col_iota = jax.lax.broadcasted_iota(jnp.int32, (C, L), 1)
    onehot = (col_iota == hh[:, None]).astype(bf16)
    x4h = jnp.dot(onehot, xb, preferred_element_type=f32)              # (C, H)

    # fused wide, lane-dense projections
    yx = jnp.dot(xb, wxh_ref[...], preferred_element_type=f32) + bxh_ref[0]   # (L, 256+7+3)
    yh = jnp.dot(x4h.astype(bf16), whh_ref[...],
                 preferred_element_type=f32) + bhh_ref[0]                     # (C, 256+7)

    p1 = yx[:, :D_SEL]                                                  # dense1(x)
    pcop_ref[0] = yx[:, D_SEL:D_SEL + OP_N]                             # op(x)
    pconn_ref[0] = yx[0:1, D_SEL + OP_N:D_SEL + OP_N + CONN_N]          # conn(x[:, 0])
    p2 = yh[:, :D_SEL]                                                  # dense2(x4h)
    psel_ref[0] = yh[:, D_SEL:D_SEL + AGG_N]                            # agg(x4h)

    # pcsel = dense3(tanh(p1[:, None] + p2[None]))
    # VPU multiply by w_d3 + lane-axis sum; no per-column N=1 MXU matmuls.
    w3 = wd3_ref[...]                                                   # (1, 256) f32
    cols = []
    for c in range(C):                  # static unroll, C is small; VPU/EUP only
        t = jnp.tanh(p1 + p2[c:c + 1, :])                               # (L, 256)
        cols.append(jnp.sum(t * w3, axis=-1, keepdims=True))            # (L, 1)
    pcsel = jnp.concatenate(cols, axis=1) + bd3_ref[0, 0]               # (L, C)
    pcsel_ref[0] = pcsel - (1.0 - hm[None, :]) * 1e10


def fused_call(emb, mask3, h3, hm3, p):
    B, L, H = emb.shape
    C = h3.shape[-1]
    F = p['w_ff1'].shape[1]
    w_keys = ('wq', 'bq', 'wk', 'bk', 'wv', 'bv', 'wo', 'bo',
              'ln1_g', 'ln1_b', 'w_ff1', 'b_ff1', 'w_ff2', 'b_ff2',
              'ln2_g', 'ln2_b', 'w_xh', 'b_xh', 'w_hh', 'b_hh', 'w_d3', 'b_d3')
    w_args = tuple(p[k] for k in w_keys)

    in_specs = ([pl.BlockSpec((1, L, H), lambda b: (b, 0, 0)),
                 pl.BlockSpec((1, 1, L), lambda b: (b, 0, 0)),
                 pl.BlockSpec((1, 1, C), lambda b: (b, 0, 0)),
                 pl.BlockSpec((1, 1, C), lambda b: (b, 0, 0))]
                + [_full_spec(w) for w in w_args])
    out_shape = (
        jax.ShapeDtypeStruct((B, C, AGG_N), jnp.float32),   # psel
        jax.ShapeDtypeStruct((B, 1, CONN_N), jnp.float32),  # pconn (squeeze later)
        jax.ShapeDtypeStruct((B, L, OP_N), jnp.float32),    # pcop
        jax.ShapeDtypeStruct((B, L, C), jnp.float32),       # pcsel
    )
    out_specs = (
        pl.BlockSpec((1, C, AGG_N), lambda b: (b, 0, 0)),
        pl.BlockSpec((1, 1, CONN_N), lambda b: (b, 0, 0)),
        pl.BlockSpec((1, L, OP_N), lambda b: (b, 0, 0)),
        pl.BlockSpec((1, L, C), lambda b: (b, 0, 0)),
    )

    # advisory cost estimate so XLA overlaps the embedding gather / reshapes
    flops = B * (4 * 2 * L * H * H            # q,k,v,o projections
                 + 2 * 2 * L * L * H          # scores + p@v
                 + 2 * 2 * L * H * F          # FFN
                 + 2 * C * L * H              # one-hot header gather
                 + 2 * L * H * (D_SEL + OP_N + CONN_N)
                 + 2 * C * H * (D_SEL + AGG_N)
                 + 3 * C * L * D_SEL)         # pcsel VPU add/mul/reduce
    transcendentals = B * (L * L + L * F + C * L * D_SEL + 4 * L)
    io_bytes = (int(emb.size) * 4 + int(mask3.size) * 4
                + int(h3.size) * 4 + int(hm3.size) * 4
                + sum(int(w.size) * w.dtype.itemsize for w in w_args)
                + B * (C * AGG_N + CONN_N + L * OP_N + L * C) * 4)
    cost = pl.CostEstimate(flops=int(flops),
                           transcendentals=int(transcendentals),
                           bytes_accessed=int(io_bytes))

    return pl.pallas_call(
        fused_kernel,
        out_shape=out_shape,
        grid=(B,),
        in_specs=in_specs,
        out_specs=out_specs,
        compiler_params=pltpu.CompilerParams(
            dimension_semantics=("parallel",),          # megacore over batch
            vmem_limit_bytes=64 * 1024 * 1024),         # > default scoped limit
        cost_estimate=cost,
    )(emb, mask3, h3, hm3, *w_args)


# ----------------------------------------------------------------------------
# Parameters + full forward (glue in plain JAX)
# ----------------------------------------------------------------------------
def init_params(key, V, L, H, F):
    ks = list(jax.random.split(key, 32))
    bf16 = jnp.bfloat16

    def nrm(shape, scale=0.02):
        return (scale * jax.random.normal(ks.pop(), shape)).astype(jnp.float32)

    p = {}
    p['emb'] = nrm((V, H))
    p['pos'] = nrm((L, H))
    # encoder: MXU weights stored bf16, biases / layernorm params f32
    p['wq'], p['bq'] = nrm((H, H)).astype(bf16), nrm((1, H))
    p['wk'], p['bk'] = nrm((H, H)).astype(bf16), nrm((1, H))
    p['wv'], p['bv'] = nrm((H, H)).astype(bf16), nrm((1, H))
    p['wo'], p['bo'] = nrm((H, H)).astype(bf16), nrm((1, H))
    p['ln1_g'], p['ln1_b'] = jnp.ones((1, H), jnp.float32), nrm((1, H))
    p['w_ff1'], p['b_ff1'] = nrm((H, F)).astype(bf16), nrm((1, F))
    p['w_ff2'], p['b_ff2'] = nrm((F, H)).astype(bf16), nrm((1, H))
    p['ln2_g'], p['ln2_b'] = jnp.ones((1, H), jnp.float32), nrm((1, H))

    # heads: f32 masters, bf16 copies for the reference, fused bf16 for the kernel
    w_conn, b_conn = nrm((H, CONN_N)), nrm((1, CONN_N))
    w_agg, b_agg = nrm((H, AGG_N)), nrm((1, AGG_N))
    w_op, b_op = nrm((H, OP_N)), nrm((1, OP_N))
    w_d1, b_d1 = nrm((H, D_SEL)), nrm((1, D_SEL))
    w_d2, b_d2 = nrm((H, D_SEL)), nrm((1, D_SEL))
    p['w_conn'], p['b_conn'] = w_conn.astype(bf16), b_conn
    p['w_agg'], p['b_agg'] = w_agg.astype(bf16), b_agg
    p['w_op'], p['b_op'] = w_op.astype(bf16), b_op
    p['w_d1'], p['b_d1'] = w_d1.astype(bf16), b_d1
    p['w_d2'], p['b_d2'] = w_d2.astype(bf16), b_d2
    # fused [dense1 | op | conn] (applied to x) and [dense2 | agg] (applied to x4h)
    p['w_xh'] = jnp.concatenate([w_d1, w_op, w_conn], axis=1).astype(bf16)
    p['b_xh'] = jnp.concatenate([b_d1, b_op, b_conn], axis=1)
    p['w_hh'] = jnp.concatenate([w_d2, w_agg], axis=1).astype(bf16)
    p['b_hh'] = jnp.concatenate([b_d2, b_agg], axis=1)
    p['w_d3'], p['b_d3'] = nrm((1, D_SEL)), nrm((1, 1))   # dense3 stays f32 (VPU)
    return p


def model_forward(params, x1, attention_mask, h, hm):
    B, L = x1.shape
    C = h.shape[1]
    emb = params['emb'][x1] + params['pos'][None, :, :]            # (B, L, H)
    mask3 = attention_mask.astype(jnp.float32).reshape(B, 1, L)
    h3 = h.astype(jnp.int32).reshape(B, 1, C)
    hm3 = hm.astype(jnp.float32).reshape(B, 1, C)
    psel, pconn3, pcop, pcsel = fused_call(emb, mask3, h3, hm3, params)
    return psel, pconn3[:, 0, :], pcop, pcsel


# Pure-JAX reference (same synthetic bf16 weights / f32 accumulation).
def reference_forward(p, x1, attention_mask, h, hm):
    f32, bf16 = jnp.float32, jnp.bfloat16
    H = p['emb'].shape[1]

    def bmm(a, w):
        return jnp.dot(a.astype(bf16), w, preferred_element_type=f32)

    def layernorm(y, g, b):
        mu = jnp.mean(y, axis=-1, keepdims=True)
        var = jnp.mean((y - mu) ** 2, axis=-1, keepdims=True)
        return (y - mu) * jax.lax.rsqrt(var + 1e-12) * g + b

    x = p['emb'][x1] + p['pos'][None, :, :]
    m = attention_mask.astype(f32)

    q = bmm(x, p['wq']) + p['bq'][0]
    k = bmm(x, p['wk']) + p['bk'][0]
    v = bmm(x, p['wv']) + p['bv'][0]
    s = jnp.einsum('bld,bmd->blm', q.astype(bf16), k.astype(bf16),
                   preferred_element_type=f32) * (1.0 / math.sqrt(H))
    s = s + (m[:, None, :] - 1.0) * 1e9
    attn = jnp.einsum('blm,bmd->bld', jax.nn.softmax(s, axis=-1).astype(bf16),
                      v.astype(bf16), preferred_element_type=f32)
    attn = bmm(attn, p['wo']) + p['bo'][0]
    x = layernorm(x + attn, p['ln1_g'][0], p['ln1_b'][0])
    ff = jax.nn.gelu(bmm(x, p['w_ff1']) + p['b_ff1'][0], approximate=True)
    ff = bmm(ff, p['w_ff2']) + p['b_ff2'][0]
    x = layernorm(x + ff, p['ln2_g'][0], p['ln2_b'][0])

    pconn = bmm(x[:, 0], p['w_conn']) + p['b_conn'][0]
    x4h = jnp.take_along_axis(x, h[:, :, None], axis=1)
    psel = bmm(x4h, p['w_agg']) + p['b_agg'][0]
    pcop = bmm(x, p['w_op']) + p['b_op'][0]
    p1 = bmm(x, p['w_d1']) + p['b_d1'][0]
    p2 = bmm(x4h, p['w_d2']) + p['b_d2'][0]
    t = jnp.tanh(p1[:, :, None, :] + p2[:, None, :, :])              # (B, L, C, 256)
    pcsel = jnp.sum(t * p['w_d3'][0][None, None, None, :], axis=-1) + p['b_d3'][0, 0]
    pcsel = pcsel - (1.0 - hm[:, None, :]) * 1e10
    return psel, pconn, pcop, pcsel


if __name__ == "__main__":
    B, L, H, C, V, F = 2, 8, 32, 4, 50, 128
    key = jax.random.PRNGKey(0)
    kp, k1, k2 = jax.random.split(key, 3)
    params = init_params(kp, V, L, H, F)

    x1 = jax.random.randint(k1, (B, L), 0, V, dtype=jnp.int32)
    attention_mask = jnp.ones((B, L), jnp.float32).at[1, L - 2:].set(0.0)
    h = jax.random.randint(k2, (B, C), 0, L, dtype=jnp.int32)
    hm = jnp.ones((B, C), jnp.float32).at[1, C - 1:].set(0.0)

    outs = model_forward(params, x1, attention_mask, h, hm)
    outs = jax.block_until_ready(outs)
    refs = reference_forward(params, x1, attention_mask, h, hm)

    for got, ref in zip(outs, refs):
        assert got.shape == ref.shape, (got.shape, ref.shape)
        err = jnp.max(jnp.abs(got - ref) / (1.0 + jnp.abs(ref)))
        assert float(err) < 2e-2, float(err)

    print("KERNEL_OK")
</pallas_src>

<mosaic_0001>
module attributes {stable_mosaic.version = 11 : i64} {
  func.func @fused_kernel(%arg0: i32, %arg1: memref<1x8x32xf32, #tpu.memory_space<vmem>>, %arg2: memref<1x1x8xf32, #tpu.memory_space<vmem>>, %arg3: memref<1x1x4xi32, #tpu.memory_space<vmem>>, %arg4: memref<1x1x4xf32, #tpu.memory_space<vmem>>, %arg5: memref<32x32xbf16, #tpu.memory_space<vmem>>, %arg6: memref<1x32xf32, #tpu.memory_space<vmem>>, %arg7: memref<32x32xbf16, #tpu.memory_space<vmem>>, %arg8: memref<1x32xf32, #tpu.memory_space<vmem>>, %arg9: memref<32x32xbf16, #tpu.memory_space<vmem>>, %arg10: memref<1x32xf32, #tpu.memory_space<vmem>>, %arg11: memref<32x32xbf16, #tpu.memory_space<vmem>>, %arg12: memref<1x32xf32, #tpu.memory_space<vmem>>, %arg13: memref<1x32xf32, #tpu.memory_space<vmem>>, %arg14: memref<1x32xf32, #tpu.memory_space<vmem>>, %arg15: memref<32x128xbf16, #tpu.memory_space<vmem>>, %arg16: memref<1x128xf32, #tpu.memory_space<vmem>>, %arg17: memref<128x32xbf16, #tpu.memory_space<vmem>>, %arg18: memref<1x32xf32, #tpu.memory_space<vmem>>, %arg19: memref<1x32xf32, #tpu.memory_space<vmem>>, %arg20: memref<1x32xf32, #tpu.memory_space<vmem>>, %arg21: memref<32x266xbf16, #tpu.memory_space<vmem>>, %arg22: memref<1x266xf32, #tpu.memory_space<vmem>>, %arg23: memref<32x263xbf16, #tpu.memory_space<vmem>>, %arg24: memref<1x263xf32, #tpu.memory_space<vmem>>, %arg25: memref<1x256xf32, #tpu.memory_space<vmem>>, %arg26: memref<1x1xf32, #tpu.memory_space<vmem>>, %arg27: memref<1x4x7xf32, #tpu.memory_space<vmem>>, %arg28: memref<1x1x3xf32, #tpu.memory_space<vmem>>, %arg29: memref<1x8x7xf32, #tpu.memory_space<vmem>>, %arg30: memref<1x8x4xf32, #tpu.memory_space<vmem>>) attributes {dimension_semantics = [#tpu.dimension_semantics<parallel>], iteration_bounds = array<i64: 2>, scalar_prefetch = 0 : i64, scratch_operands = 0 : i64, tpu.core_type = #tpu.core_type<tc>, window_params = [{transform_indices = @transform_0, window_bounds = array<i64: 1, 8, 32>}, {transform_indices = @transform_1, window_bounds = array<i64: 1, 1, 8>}, {transform_indices = @transform_2, window_bounds = array<i64: 1, 1, 4>}, {transform_indices = @transform_3, window_bounds = array<i64: 1, 1, 4>}, {pipeline_mode = #tpu.pipeline_mode<synchronous>, transform_indices = @transform_4, window_bounds = array<i64: 32, 32>}, {pipeline_mode = #tpu.pipeline_mode<synchronous>, transform_indices = @transform_5, window_bounds = array<i64: 1, 32>}, {pipeline_mode = #tpu.pipeline_mode<synchronous>, transform_indices = @transform_6, window_bounds = array<i64: 32, 32>}, {pipeline_mode = #tpu.pipeline_mode<synchronous>, transform_indices = @transform_7, window_bounds = array<i64: 1, 32>}, {pipeline_mode = #tpu.pipeline_mode<synchronous>, transform_indices = @transform_8, window_bounds = array<i64: 32, 32>}, {pipeline_mode = #tpu.pipeline_mode<synchronous>, transform_indices = @transform_9, window_bounds = array<i64: 1, 32>}, {pipeline_mode = #tpu.pipeline_mode<synchronous>, transform_indices = @transform_10, window_bounds = array<i64: 32, 32>}, {pipeline_mode = #tpu.pipeline_mode<synchronous>, transform_indices = @transform_11, window_bounds = array<i64: 1, 32>}, {pipeline_mode = #tpu.pipeline_mode<synchronous>, transform_indices = @transform_12, window_bounds = array<i64: 1, 32>}, {pipeline_mode = #tpu.pipeline_mode<synchronous>, transform_indices = @transform_13, window_bounds = array<i64: 1, 32>}, {pipeline_mode = #tpu.pipeline_mode<synchronous>, transform_indices = @transform_14, window_bounds = array<i64: 32, 128>}, {pipeline_mode = #tpu.pipeline_mode<synchronous>, transform_indices = @transform_15, window_bounds = array<i64: 1, 128>}, {pipeline_mode = #tpu.pipeline_mode<synchronous>, transform_indices = @transform_16, window_bounds = array<i64: 128, 32>}, {pipeline_mode = #tpu.pipeline_mode<synchronous>, transform_indices = @transform_17, window_bounds = array<i64: 1, 32>}, {pipeline_mode = #tpu.pipeline_mode<synchronous>, transform_indices = @transform_18, window_bounds = array<i64: 1, 32>}, {pipeline_mode = #tpu.pipeline_mode<synchronous>, transform_indices = @transform_19, window_bounds = array<i64: 1, 32>}, {pipeline_mode = #tpu.pipeline_mode<synchronous>, transform_indices = @transform_20, window_bounds = array<i64: 32, 266>}, {pipeline_mode = #tpu.pipeline_mode<synchronous>, transform_indices = @transform_21, window_bounds = array<i64: 1, 266>}, {pipeline_mode = #tpu.pipeline_mode<synchronous>, transform_indices = @transform_22, window_bounds = array<i64: 32, 263>}, {pipeline_mode = #tpu.pipeline_mode<synchronous>, transform_indices = @transform_23, window_bounds = array<i64: 1, 263>}, {pipeline_mode = #tpu.pipeline_mode<synchronous>, transform_indices = @transform_24, window_bounds = array<i64: 1, 256>}, {pipeline_mode = #tpu.pipeline_mode<synchronous>, transform_indices = @transform_25, window_bounds = array<i64: 1, 1>}, {transform_indices = @transform_26, window_bounds = array<i64: 1, 4, 7>}, {transform_indices = @transform_27, window_bounds = array<i64: 1, 1, 3>}, {transform_indices = @transform_28, window_bounds = array<i64: 1, 8, 7>}, {transform_indices = @transform_29, window_bounds = array<i64: 1, 8, 4>}]} {
    %c0 = arith.constant 0 : index
    %c0_0 = arith.constant 0 : index
    %c0_1 = arith.constant 0 : index
    %0 = vector.load %arg1[%c0, %c0_0, %c0_1] : memref<1x8x32xf32, #tpu.memory_space<vmem>>, vector<1x8x32xf32>
    %1 = vector.shape_cast %0 : vector<1x8x32xf32> to vector<8x32xf32>
    %c0_2 = arith.constant 0 : index
    %c0_3 = arith.constant 0 : index
    %c0_4 = arith.constant 0 : index
    %2 = vector.load %arg2[%c0_2, %c0_3, %c0_4] : memref<1x1x8xf32, #tpu.memory_space<vmem>>, vector<1x1x8xf32>
    %3 = vector.shape_cast %2 : vector<1x1x8xf32> to vector<8xf32>
    %c0_5 = arith.constant 0 : index
    %c0_6 = arith.constant 0 : index
    %c0_7 = arith.constant 0 : index
    %4 = vector.load %arg3[%c0_5, %c0_6, %c0_7] : memref<1x1x4xi32, #tpu.memory_space<vmem>>, vector<1x1x4xi32>
    %5 = vector.shape_cast %4 : vector<1x1x4xi32> to vector<4xi32>
    %c0_8 = arith.constant 0 : index
    %c0_9 = arith.constant 0 : index
    %c0_10 = arith.constant 0 : index
    %6 = vector.load %arg4[%c0_8, %c0_9, %c0_10] : memref<1x1x4xf32, #tpu.memory_space<vmem>>, vector<1x1x4xf32>
    %7 = vector.shape_cast %6 : vector<1x1x4xf32> to vector<4xf32>
    %8 = arith.truncf %1 : vector<8x32xf32> to vector<8x32xbf16>
    %c0_11 = arith.constant 0 : index
    %c0_12 = arith.constant 0 : index
    %9 = vector.load %arg5[%c0_11, %c0_12] : memref<32x32xbf16, #tpu.memory_space<vmem>>, vector<32x32xbf16>
    %cst = arith.constant dense<0.000000e+00> : vector<8x32xf32>
    %10 = tpu.matmul %8, %9, %cst {dimension_numbers = #tpu.dot_dimension_numbers<[1], [0], [0], [1], [0, 0, 1, 1], [], []>} : vector<8x32xbf16>, vector<32x32xbf16>, vector<8x32xf32> -> vector<8x32xf32>
    %c0_13 = arith.constant 0 : index
    %c0_14 = arith.constant 0 : index
    %11 = vector.load %arg6[%c0_13, %c0_14] : memref<1x32xf32, #tpu.memory_space<vmem>>, vector<1x32xf32>
    %12 = vector.shape_cast %11 : vector<1x32xf32> to vector<32xf32>
    %13 = vector.shape_cast %12 : vector<32xf32> to vector<1x32xf32>
    %14 = vector.broadcast %13 : vector<1x32xf32> to vector<8x32xf32>
    %15 = arith.addf %10, %14 : vector<8x32xf32>
    %16 = arith.truncf %1 : vector<8x32xf32> to vector<8x32xbf16>
    %c0_15 = arith.constant 0 : index
    %c0_16 = arith.constant 0 : index
    %17 = vector.load %arg7[%c0_15, %c0_16] : memref<32x32xbf16, #tpu.memory_space<vmem>>, vector<32x32xbf16>
    %cst_17 = arith.constant dense<0.000000e+00> : vector<8x32xf32>
    %18 = tpu.matmul %16, %17, %cst_17 {dimension_numbers = #tpu.dot_dimension_numbers<[1], [0], [0], [1], [0, 0, 1, 1], [], []>} : vector<8x32xbf16>, vector<32x32xbf16>, vector<8x32xf32> -> vector<8x32xf32>
    %c0_18 = arith.constant 0 : index
    %c0_19 = arith.constant 0 : index
    %19 = vector.load %arg8[%c0_18, %c0_19] : memref<1x32xf32, #tpu.memory_space<vmem>>, vector<1x32xf32>
    %20 = vector.shape_cast %19 : vector<1x32xf32> to vector<32xf32>
    %21 = vector.shape_cast %20 : vector<32xf32> to vector<1x32xf32>
    %22 = vector.broadcast %21 : vector<1x32xf32> to vector<8x32xf32>
    %23 = arith.addf %18, %22 : vector<8x32xf32>
    %24 = arith.truncf %1 : vector<8x32xf32> to vector<8x32xbf16>
    %c0_20 = arith.constant 0 : index
    %c0_21 = arith.constant 0 : index
    %25 = vector.load %arg9[%c0_20, %c0_21] : memref<32x32xbf16, #tpu.memory_space<vmem>>, vector<32x32xbf16>
    %cst_22 = arith.constant dense<0.000000e+00> : vector<8x32xf32>
    %26 = tpu.matmul %24, %25, %cst_22 {dimension_numbers = #tpu.dot_dimension_numbers<[1], [0], [0], [1], [0, 0, 1, 1], [], []>} : vector<8x32xbf16>, vector<32x32xbf16>, vector<8x32xf32> -> vector<8x32xf32>
    %c0_23 = arith.constant 0 : index
    %c0_24 = arith.constant 0 : index
    %27 = vector.load %arg10[%c0_23, %c0_24] : memref<1x32xf32, #tpu.memory_space<vmem>>, vector<1x32xf32>
    %28 = vector.shape_cast %27 : vector<1x32xf32> to vector<32xf32>
    %29 = vector.shape_cast %28 : vector<32xf32> to vector<1x32xf32>
    %30 = vector.broadcast %29 : vector<1x32xf32> to vector<8x32xf32>
    %31 = arith.addf %26, %30 : vector<8x32xf32>
    %32 = arith.truncf %15 : vector<8x32xf32> to vector<8x32xbf16>
    %33 = arith.truncf %23 : vector<8x32xf32> to vector<8x32xbf16>
    %cst_25 = arith.constant dense<0.000000e+00> : vector<8x8xf32>
    %34 = tpu.matmul %32, %33, %cst_25 {dimension_numbers = #tpu.dot_dimension_numbers<[1], [1], [0], [0], [0, 0, 1, 0], [], []>} : vector<8x32xbf16>, vector<8x32xbf16>, vector<8x8xf32> -> vector<8x8xf32>
    %cst_26 = arith.constant 0.176776692 : f32
    %35 = vector.broadcast %cst_26 : f32 to vector<8x8xf32>
    %36 = arith.mulf %34, %35 : vector<8x8xf32>
    %37 = vector.shape_cast %3 : vector<8xf32> to vector<1x8xf32>
    %cst_27 = arith.constant 1.000000e+00 : f32
    %38 = vector.broadcast %cst_27 : f32 to vector<1x8xf32>
    %39 = arith.subf %37, %38 : vector<1x8xf32>
    %cst_28 = arith.constant 1.000000e+09 : f32
    %40 = vector.broadcast %cst_28 : f32 to vector<1x8xf32>
    %41 = arith.mulf %39, %40 : vector<1x8xf32>
    %42 = vector.broadcast %41 : vector<1x8xf32> to vector<8x8xf32>
    %43 = arith.addf %36, %42 : vector<8x8xf32>
    %cst_29 = arith.constant dense<0xFF800000> : vector<8xf32>
    %44 = vector.multi_reduction <maximumf>, %43, %cst_29 [1] : vector<8x8xf32> to vector<8xf32>
    %45 = vector.shape_cast %44 : vector<8xf32> to vector<8x1xf32>
    %46 = vector.broadcast %45 : vector<8x1xf32> to vector<8x8xf32>
    %47 = arith.subf %43, %46 : vector<8x8xf32>
    %48 = math.exp %47 : vector<8x8xf32>
    %cst_30 = arith.constant dense<0.000000e+00> : vector<8xf32>
    %49 = vector.multi_reduction <add>, %48, %cst_30 [1] : vector<8x8xf32> to vector<8xf32>
    %50 = vector.shape_cast %49 : vector<8xf32> to vector<8x1xf32>
    %51 = tpu.reciprocal %50 {approx = true} : vector<8x1xf32> -> vector<8x1xf32>
    %52 = vector.broadcast %51 : vector<8x1xf32> to vector<8x8xf32>
    %53 = arith.mulf %48, %52 : vector<8x8xf32>
    %54 = arith.truncf %53 : vector<8x8xf32> to vector<8x8xbf16>
    %55 = arith.truncf %31 : vector<8x32xf32> to vector<8x32xbf16>
    %cst_31 = arith.constant dense<0.000000e+00> : vector<8x32xf32>
    %56 = tpu.matmul %54, %55, %cst_31 {dimension_numbers = #tpu.dot_dimension_numbers<[1], [0], [0], [1], [0, 0, 1, 1], [], []>} : vector<8x8xbf16>, vector<8x32xbf16>, vector<8x32xf32> -> vector<8x32xf32>
    %57 = arith.truncf %56 : vector<8x32xf32> to vector<8x32xbf16>
    %c0_32 = arith.constant 0 : index
    %c0_33 = arith.constant 0 : index
    %58 = vector.load %arg11[%c0_32, %c0_33] : memref<32x32xbf16, #tpu.memory_space<vmem>>, vector<32x32xbf16>
    %cst_34 = arith.constant dense<0.000000e+00> : vector<8x32xf32>
    %59 = tpu.matmul %57, %58, %cst_34 {dimension_numbers = #tpu.dot_dimension_numbers<[1], [0], [0], [1], [0, 0, 1, 1], [], []>} : vector<8x32xbf16>, vector<32x32xbf16>, vector<8x32xf32> -> vector<8x32xf32>
    %c0_35 = arith.constant 0 : index
    %c0_36 = arith.constant 0 : index
    %60 = vector.load %arg12[%c0_35, %c0_36] : memref<1x32xf32, #tpu.memory_space<vmem>>, vector<1x32xf32>
    %61 = vector.shape_cast %60 : vector<1x32xf32> to vector<32xf32>
    %62 = vector.shape_cast %61 : vector<32xf32> to vector<1x32xf32>
    %63 = vector.broadcast %62 : vector<1x32xf32> to vector<8x32xf32>
    %64 = arith.addf %59, %63 : vector<8x32xf32>
    %65 = arith.addf %1, %64 : vector<8x32xf32>
    %c0_37 = arith.constant 0 : index
    %c0_38 = arith.constant 0 : index
    %66 = vector.load %arg13[%c0_37, %c0_38] : memref<1x32xf32, #tpu.memory_space<vmem>>, vector<1x32xf32>
    %67 = vector.shape_cast %66 : vector<1x32xf32> to vector<32xf32>
    %c0_39 = arith.constant 0 : index
    %c0_40 = arith.constant 0 : index
    %68 = vector.load %arg14[%c0_39, %c0_40] : memref<1x32xf32, #tpu.memory_space<vmem>>, vector<1x32xf32>
    %69 = vector.shape_cast %68 : vector<1x32xf32> to vector<32xf32>
    %cst_41 = arith.constant dense<0.000000e+00> : vector<8xf32>
    %70 = vector.multi_reduction <add>, %65, %cst_41 [1] : vector<8x32xf32> to vector<8xf32>
    %71 = vector.shape_cast %70 : vector<8xf32> to vector<8x1xf32>
    %cst_42 = arith.constant 3.200000e+01 : f32
    %72 = vector.broadcast %cst_42 : f32 to vector<8x1xf32>
    %73 = arith.divf %71, %72 : vector<8x1xf32>
    %74 = vector.broadcast %73 : vector<8x1xf32> to vector<8x32xf32>
    %75 = arith.subf %65, %74 : vector<8x32xf32>
    %76 = arith.mulf %75, %75 : vector<8x32xf32>
    %cst_43 = arith.constant dense<0.000000e+00> : vector<8xf32>
    %77 = vector.multi_reduction <add>, %76, %cst_43 [1] : vector<8x32xf32> to vector<8xf32>
    %78 = vector.shape_cast %77 : vector<8xf32> to vector<8x1xf32>
    %cst_44 = arith.constant 3.200000e+01 : f32
    %79 = vector.broadcast %cst_44 : f32 to vector<8x1xf32>
    %80 = arith.divf %78, %79 : vector<8x1xf32>
    %81 = vector.broadcast %73 : vector<8x1xf32> to vector<8x32xf32>
    %82 = arith.subf %65, %81 : vector<8x32xf32>
    %cst_45 = arith.constant 9.99999996E-13 : f32
    %83 = vector.broadcast %cst_45 : f32 to vector<8x1xf32>
    %84 = arith.addf %80, %83 : vector<8x1xf32>
    %85 = math.rsqrt %84 : vector<8x1xf32>
    %86 = vector.broadcast %85 : vector<8x1xf32> to vector<8x32xf32>
    %87 = arith.mulf %82, %86 : vector<8x32xf32>
    %88 = vector.shape_cast %67 : vector<32xf32> to vector<1x32xf32>
    %89 = vector.broadcast %88 : vector<1x32xf32> to vector<8x32xf32>
    %90 = arith.mulf %87, %89 : vector<8x32xf32>
    %91 = vector.shape_cast %69 : vector<32xf32> to vector<1x32xf32>
    %92 = vector.broadcast %91 : vector<1x32xf32> to vector<8x32xf32>
    %93 = arith.addf %90, %92 : vector<8x32xf32>
    %94 = arith.truncf %93 : vector<8x32xf32> to vector<8x32xbf16>
    %c0_46 = arith.constant 0 : index
    %c0_47 = arith.constant 0 : index
    %95 = vector.load %arg15[%c0_46, %c0_47] : memref<32x128xbf16, #tpu.memory_space<vmem>>, vector<32x128xbf16>
    %cst_48 = arith.constant dense<0.000000e+00> : vector<8x128xf32>
    %96 = tpu.matmul %94, %95, %cst_48 {dimension_numbers = #tpu.dot_dimension_numbers<[1], [0], [0], [1], [0, 0, 1, 1], [], []>} : vector<8x32xbf16>, vector<32x128xbf16>, vector<8x128xf32> -> vector<8x128xf32>
    %c0_49 = arith.constant 0 : index
    %c0_50 = arith.constant 0 : index
    %97 = vector.load %arg16[%c0_49, %c0_50] : memref<1x128xf32, #tpu.memory_space<vmem>>, vector<1x128xf32>
    %98 = vector.shape_cast %97 : vector<1x128xf32> to vector<128xf32>
    %99 = vector.shape_cast %98 : vector<128xf32> to vector<1x128xf32>
    %100 = vector.broadcast %99 : vector<1x128xf32> to vector<8x128xf32>
    %101 = arith.addf %96, %100 : vector<8x128xf32>
    %102 = arith.mulf %101, %101 : vector<8x128xf32>
    %103 = arith.mulf %101, %102 : vector<8x128xf32>
    %cst_51 = arith.constant 4.471500e-02 : f32
    %104 = vector.broadcast %cst_51 : f32 to vector<8x128xf32>
    %105 = arith.mulf %104, %103 : vector<8x128xf32>
    %106 = arith.addf %101, %105 : vector<8x128xf32>
    %cst_52 = arith.constant 0.797884583 : f32
    %107 = vector.broadcast %cst_52 : f32 to vector<8x128xf32>
    %108 = arith.mulf %107, %106 : vector<8x128xf32>
    %109 = math.tanh %108 : vector<8x128xf32>
    %cst_53 = arith.constant 1.000000e+00 : f32
    %110 = vector.broadcast %cst_53 : f32 to vector<8x128xf32>
    %111 = arith.addf %110, %109 : vector<8x128xf32>
    %cst_54 = arith.constant 5.000000e-01 : f32
    %112 = vector.broadcast %cst_54 : f32 to vector<8x128xf32>
    %113 = arith.mulf %112, %111 : vector<8x128xf32>
    %114 = arith.mulf %101, %113 : vector<8x128xf32>
    %115 = arith.truncf %114 : vector<8x128xf32> to vector<8x128xbf16>
    %c0_55 = arith.constant 0 : index
    %c0_56 = arith.constant 0 : index
    %116 = vector.load %arg17[%c0_55, %c0_56] : memref<128x32xbf16, #tpu.memory_space<vmem>>, vector<128x32xbf16>
    %cst_57 = arith.constant dense<0.000000e+00> : vector<8x32xf32>
    %117 = tpu.matmul %115, %116, %cst_57 {dimension_numbers = #tpu.dot_dimension_numbers<[1], [0], [0], [1], [0, 0, 1, 1], [], []>} : vector<8x128xbf16>, vector<128x32xbf16>, vector<8x32xf32> -> vector<8x32xf32>
    %c0_58 = arith.constant 0 : index
    %c0_59 = arith.constant 0 : index
    %118 = vector.load %arg18[%c0_58, %c0_59] : memref<1x32xf32, #tpu.memory_space<vmem>>, vector<1x32xf32>
    %119 = vector.shape_cast %118 : vector<1x32xf32> to vector<32xf32>
    %120 = vector.shape_cast %119 : vector<32xf32> to vector<1x32xf32>
    %121 = vector.broadcast %120 : vector<1x32xf32> to vector<8x32xf32>
    %122 = arith.addf %117, %121 : vector<8x32xf32>
    %123 = arith.addf %93, %122 : vector<8x32xf32>
    %c0_60 = arith.constant 0 : index
    %c0_61 = arith.constant 0 : index
    %124 = vector.load %arg19[%c0_60, %c0_61] : memref<1x32xf32, #tpu.memory_space<vmem>>, vector<1x32xf32>
    %125 = vector.shape_cast %124 : vector<1x32xf32> to vector<32xf32>
    %c0_62 = arith.constant 0 : index
    %c0_63 = arith.constant 0 : index
    %126 = vector.load %arg20[%c0_62, %c0_63] : memref<1x32xf32, #tpu.memory_space<vmem>>, vector<1x32xf32>
    %127 = vector.shape_cast %126 : vector<1x32xf32> to vector<32xf32>
    %cst_64 = arith.constant dense<0.000000e+00> : vector<8xf32>
    %128 = vector.multi_reduction <add>, %123, %cst_64 [1] : vector<8x32xf32> to vector<8xf32>
    %129 = vector.shape_cast %128 : vector<8xf32> to vector<8x1xf32>
    %cst_65 = arith.constant 3.200000e+01 : f32
    %130 = vector.broadcast %cst_65 : f32 to vector<8x1xf32>
    %131 = arith.divf %129, %130 : vector<8x1xf32>
    %132 = vector.broadcast %131 : vector<8x1xf32> to vector<8x32xf32>
    %133 = arith.subf %123, %132 : vector<8x32xf32>
    %134 = arith.mulf %133, %133 : vector<8x32xf32>
    %cst_66 = arith.constant dense<0.000000e+00> : vector<8xf32>
    %135 = vector.multi_reduction <add>, %134, %cst_66 [1] : vector<8x32xf32> to vector<8xf32>
    %136 = vector.shape_cast %135 : vector<8xf32> to vector<8x1xf32>
    %cst_67 = arith.constant 3.200000e+01 : f32
    %137 = vector.broadcast %cst_67 : f32 to vector<8x1xf32>
    %138 = arith.divf %136, %137 : vector<8x1xf32>
    %139 = vector.broadcast %131 : vector<8x1xf32> to vector<8x32xf32>
    %140 = arith.subf %123, %139 : vector<8x32xf32>
    %cst_68 = arith.constant 9.99999996E-13 : f32
    %141 = vector.broadcast %cst_68 : f32 to vector<8x1xf32>
    %142 = arith.addf %138, %141 : vector<8x1xf32>
    %143 = math.rsqrt %142 : vector<8x1xf32>
    %144 = vector.broadcast %143 : vector<8x1xf32> to vector<8x32xf32>
    %145 = arith.mulf %140, %144 : vector<8x32xf32>
    %146 = vector.shape_cast %125 : vector<32xf32> to vector<1x32xf32>
    %147 = vector.broadcast %146 : vector<1x32xf32> to vector<8x32xf32>
    %148 = arith.mulf %145, %147 : vector<8x32xf32>
    %149 = vector.shape_cast %127 : vector<32xf32> to vector<1x32xf32>
    %150 = vector.broadcast %149 : vector<1x32xf32> to vector<8x32xf32>
    %151 = arith.addf %148, %150 : vector<8x32xf32>
    %152 = arith.truncf %151 : vector<8x32xf32> to vector<8x32xbf16>
    %153 = tpu.iota {dimensions = array<i32: 1>} : vector<4x8xi32>
    %154 = vector.shape_cast %5 : vector<4xi32> to vector<4x1xi32>
    %155 = vector.broadcast %154 : vector<4x1xi32> to vector<4x8xi32>
    %156 = arith.cmpi eq, %153, %155 : vector<4x8xi32>
    %157 = arith.extui %156 : vector<4x8xi1> to vector<4x8xi32>
    %158 = arith.sitofp %157 : vector<4x8xi32> to vector<4x8xf32>
    %159 = arith.truncf %158 : vector<4x8xf32> to vector<4x8xbf16>
    %cst_69 = arith.constant dense<0.000000e+00> : vector<4x32xf32>
    %160 = tpu.matmul %159, %152, %cst_69 {dimension_numbers = #tpu.dot_dimension_numbers<[1], [0], [0], [1], [0, 0, 1, 1], [], []>} : vector<4x8xbf16>, vector<8x32xbf16>, vector<4x32xf32> -> vector<4x32xf32>
    %c0_70 = arith.constant 0 : index
    %c0_71 = arith.constant 0 : index
    %161 = vector.load %arg21[%c0_70, %c0_71] : memref<32x266xbf16, #tpu.memory_space<vmem>>, vector<32x266xbf16>
    %cst_72 = arith.constant dense<0.000000e+00> : vector<8x266xf32>
    %162 = tpu.matmul %152, %161, %cst_72 {dimension_numbers = #tpu.dot_dimension_numbers<[1], [0], [0], [1], [0, 0, 1, 1], [], []>} : vector<8x32xbf16>, vector<32x266xbf16>, vector<8x266xf32> -> vector<8x266xf32>
    %c0_73 = arith.constant 0 : index
    %c0_74 = arith.constant 0 : index
    %163 = vector.load %arg22[%c0_73, %c0_74] : memref<1x266xf32, #tpu.memory_space<vmem>>, vector<1x266xf32>
    %164 = vector.shape_cast %163 : vector<1x266xf32> to vector<266xf32>
    %165 = vector.shape_cast %164 : vector<266xf32> to vector<1x266xf32>
    %166 = vector.broadcast %165 : vector<1x266xf32> to vector<8x266xf32>
    %167 = arith.addf %162, %166 : vector<8x266xf32>
    %168 = arith.truncf %160 : vector<4x32xf32> to vector<4x32xbf16>
    %c0_75 = arith.constant 0 : index
    %c0_76 = arith.constant 0 : index
    %169 = vector.load %arg23[%c0_75, %c0_76] : memref<32x263xbf16, #tpu.memory_space<vmem>>, vector<32x263xbf16>
    %cst_77 = arith.constant dense<0.000000e+00> : vector<4x263xf32>
    %170 = tpu.matmul %168, %169, %cst_77 {dimension_numbers = #tpu.dot_dimension_numbers<[1], [0], [0], [1], [0, 0, 1, 1], [], []>} : vector<4x32xbf16>, vector<32x263xbf16>, vector<4x263xf32> -> vector<4x263xf32>
    %c0_78 = arith.constant 0 : index
    %c0_79 = arith.constant 0 : index
    %171 = vector.load %arg24[%c0_78, %c0_79] : memref<1x263xf32, #tpu.memory_space<vmem>>, vector<1x263xf32>
    %172 = vector.shape_cast %171 : vector<1x263xf32> to vector<263xf32>
    %173 = vector.shape_cast %172 : vector<263xf32> to vector<1x263xf32>
    %174 = vector.broadcast %173 : vector<1x263xf32> to vector<4x263xf32>
    %175 = arith.addf %170, %174 : vector<4x263xf32>
    %176 = vector.extract_strided_slice %167 {offsets = [0, 0], sizes = [8, 256], strides = [1, 1]} : vector<8x266xf32> to vector<8x256xf32>
    %177 = vector.extract_strided_slice %167 {offsets = [0, 256], sizes = [8, 7], strides = [1, 1]} : vector<8x266xf32> to vector<8x7xf32>
    %c0_80 = arith.constant 0 : index
    %c0_81 = arith.constant 0 : index
    %c0_82 = arith.constant 0 : index
    %178 = vector.load %arg29[%c0_80, %c0_81, %c0_82] : memref<1x8x7xf32, #tpu.memory_space<vmem>>, vector<1x8x7xf32>
    %179 = vector.shape_cast %178 : vector<1x8x7xf32> to vector<8x7xf32>
    %180 = vector.shape_cast %177 : vector<8x7xf32> to vector<1x8x7xf32>
    tpu.vector_store %arg29[%c0_80, %c0_81, %c0_82], %180 {strides = array<i32>} : memref<1x8x7xf32, #tpu.memory_space<vmem>>, vector<1x8x7xf32>,
    %181 = vector.extract_strided_slice %167 {offsets = [0, 263], sizes = [1, 3], strides = [1, 1]} : vector<8x266xf32> to vector<1x3xf32>
    %c0_83 = arith.constant 0 : index
    %c0_84 = arith.constant 0 : index
    %c0_85 = arith.constant 0 : index
    %182 = vector.load %arg28[%c0_83, %c0_84, %c0_85] : memref<1x1x3xf32, #tpu.memory_space<vmem>>, vector<1x1x3xf32>
    %183 = vector.shape_cast %182 : vector<1x1x3xf32> to vector<1x3xf32>
    %184 = vector.shape_cast %181 : vector<1x3xf32> to vector<1x1x3xf32>
    tpu.vector_store %arg28[%c0_83, %c0_84, %c0_85], %184 {strides = array<i32>} : memref<1x1x3xf32, #tpu.memory_space<vmem>>, vector<1x1x3xf32>,
    %185 = vector.extract_strided_slice %175 {offsets = [0, 0], sizes = [4, 256], strides = [1, 1]} : vector<4x263xf32> to vector<4x256xf32>
    %186 = vector.extract_strided_slice %175 {offsets = [0, 256], sizes = [4, 7], strides = [1, 1]} : vector<4x263xf32> to vector<4x7xf32>
    %c0_86 = arith.constant 0 : index
    %c0_87 = arith.constant 0 : index
    %c0_88 = arith.constant 0 : index
    %187 = vector.load %arg27[%c0_86, %c0_87, %c0_88] : memref<1x4x7xf32, #tpu.memory_space<vmem>>, vector<1x4x7xf32>
    %188 = vector.shape_cast %187 : vector<1x4x7xf32> to vector<4x7xf32>
    %189 = vector.shape_cast %186 : vector<4x7xf32> to vector<1x4x7xf32>
    tpu.vector_store %arg27[%c0_86, %c0_87, %c0_88], %189 {strides = array<i32>} : memref<1x4x7xf32, #tpu.memory_space<vmem>>, vector<1x4x7xf32>,
    %c0_89 = arith.constant 0 : index
    %c0_90 = arith.constant 0 : index
    %190 = vector.load %arg25[%c0_89, %c0_90] : memref<1x256xf32, #tpu.memory_space<vmem>>, vector<1x256xf32>
    %191 = vector.extract_strided_slice %185 {offsets = [0, 0], sizes = [1, 256], strides = [1, 1]} : vector<4x256xf32> to vector<1x256xf32>
    %192 = vector.broadcast %191 : vector<1x256xf32> to vector<8x256xf32>
    %193 = arith.addf %176, %192 : vector<8x256xf32>
    %194 = math.tanh %193 : vector<8x256xf32>
    %195 = vector.broadcast %190 : vector<1x256xf32> to vector<8x256xf32>
    %196 = arith.mulf %194, %195 : vector<8x256xf32>
    %cst_91 = arith.constant dense<0.000000e+00> : vector<8xf32>
    %197 = vector.multi_reduction <add>, %196, %cst_91 [1] : vector<8x256xf32> to vector<8xf32>
    %198 = vector.shape_cast %197 : vector<8xf32> to vector<8x1xf32>
    %199 = vector.extract_strided_slice %185 {offsets = [1, 0], sizes = [1, 256], strides = [1, 1]} : vector<4x256xf32> to vector<1x256xf32>
    %200 = vector.broadcast %199 : vector<1x256xf32> to vector<8x256xf32>
    %201 = arith.addf %176, %200 : vector<8x256xf32>
    %202 = math.tanh %201 : vector<8x256xf32>
    %203 = vector.broadcast %190 : vector<1x256xf32> to vector<8x256xf32>
    %204 = arith.mulf %202, %203 : vector<8x256xf32>
    %cst_92 = arith.constant dense<0.000000e+00> : vector<8xf32>
    %205 = vector.multi_reduction <add>, %204, %cst_92 [1] : vector<8x256xf32> to vector<8xf32>
    %206 = vector.shape_cast %205 : vector<8xf32> to vector<8x1xf32>
    %207 = vector.extract_strided_slice %185 {offsets = [2, 0], sizes = [1, 256], strides = [1, 1]} : vector<4x256xf32> to vector<1x256xf32>
    %208 = vector.broadcast %207 : vector<1x256xf32> to vector<8x256xf32>
    %209 = arith.addf %176, %208 : vector<8x256xf32>
    %210 = math.tanh %209 : vector<8x256xf32>
    %211 = vector.broadcast %190 : vector<1x256xf32> to vector<8x256xf32>
    %212 = arith.mulf %210, %211 : vector<8x256xf32>
    %cst_93 = arith.constant dense<0.000000e+00> : vector<8xf32>
    %213 = vector.multi_reduction <add>, %212, %cst_93 [1] : vector<8x256xf32> to vector<8xf32>
    %214 = vector.shape_cast %213 : vector<8xf32> to vector<8x1xf32>
    %215 = vector.extract_strided_slice %185 {offsets = [3, 0], sizes = [1, 256], strides = [1, 1]} : vector<4x256xf32> to vector<1x256xf32>
    %216 = vector.broadcast %215 : vector<1x256xf32> to vector<8x256xf32>
    %217 = arith.addf %176, %216 : vector<8x256xf32>
    %218 = math.tanh %217 : vector<8x256xf32>
    %219 = vector.broadcast %190 : vector<1x256xf32> to vector<8x256xf32>
    %220 = arith.mulf %218, %219 : vector<8x256xf32>
    %cst_94 = arith.constant dense<0.000000e+00> : vector<8xf32>
    %221 = vector.multi_reduction <add>, %220, %cst_94 [1] : vector<8x256xf32> to vector<8xf32>
    %222 = vector.shape_cast %221 : vector<8xf32> to vector<8x1xf32>
    %223 = tpu.concatenate %198, %206, %214, %222 in 1 : vector<8x1xf32>, vector<8x1xf32>, vector<8x1xf32>, vector<8x1xf32> -> vector<8x4xf32>
    %c0_95 = arith.constant 0 : index
    %c0_96 = arith.constant 0 : index
    %224 = vector.load %arg26[%c0_95, %c0_96] : memref<1x1xf32, #tpu.memory_space<vmem>>, vector<1x1xf32>
    %225 = vector.extract %224[0, 0] : f32 from vector<1x1xf32>
    %226 = vector.broadcast %225 : f32 to vector<8x4xf32>
    %227 = arith.addf %223, %226 : vector<8x4xf32>
    %228 = vector.shape_cast %7 : vector<4xf32> to vector<1x4xf32>
    %cst_97 = arith.constant 1.000000e+00 : f32
    %229 = vector.broadcast %cst_97 : f32 to vector<1x4xf32>
    %230 = arith.subf %229, %228 : vector<1x4xf32>
    %cst_98 = arith.constant 1.000000e+10 : f32
    %231 = vector.broadcast %cst_98 : f32 to vector<1x4xf32>
    %232 = arith.mulf %230, %231 : vector<1x4xf32>
    %233 = vector.broadcast %232 : vector<1x4xf32> to vector<8x4xf32>
    %234 = arith.subf %227, %233 : vector<8x4xf32>
    %c0_99 = arith.constant 0 : index
    %c0_100 = arith.constant 0 : index
    %c0_101 = arith.constant 0 : index
    %235 = vector.load %arg30[%c0_99, %c0_100, %c0_101] : memref<1x8x4xf32, #tpu.memory_space<vmem>>, vector<1x8x4xf32>
    %236 = vector.shape_cast %235 : vector<1x8x4xf32> to vector<8x4xf32>
    %237 = vector.shape_cast %234 : vector<8x4xf32> to vector<1x8x4xf32>
    tpu.vector_store %arg30[%c0_99, %c0_100, %c0_101], %237 {strides = array<i32>} : memref<1x8x4xf32, #tpu.memory_space<vmem>>, vector<1x8x4xf32>,
    return
  }
  func.func @transform_0(%arg0: i32) -> (i32, i32, i32) {
    %c0_i32 = arith.constant 0 : i32
    %c0_i32_0 = arith.constant 0 : i32
    %c0_i32_1 = arith.constant 0 : i32
    return %arg0, %c0_i32, %c0_i32_0 : i32, i32, i32
  }
  func.func @transform_1(%arg0: i32) -> (i32, i32, i32) {
    %c0_i32 = arith.constant 0 : i32
    %c0_i32_0 = arith.constant 0 : i32
    %c0_i32_1 = arith.constant 0 : i32
    return %arg0, %c0_i32, %c0_i32_0 : i32, i32, i32
  }
  func.func @transform_2(%arg0: i32) -> (i32, i32, i32) {
    %c0_i32 = arith.constant 0 : i32
    %c0_i32_0 = arith.constant 0 : i32
    %c0_i32_1 = arith.constant 0 : i32
    return %arg0, %c0_i32, %c0_i32_0 : i32, i32, i32
  }
  func.func @transform_3(%arg0: i32) -> (i32, i32, i32) {
    %c0_i32 = arith.constant 0 : i32
    %c0_i32_0 = arith.constant 0 : i32
    %c0_i32_1 = arith.constant 0 : i32
    return %arg0, %c0_i32, %c0_i32_0 : i32, i32, i32
  }
  func.func @transform_4(%arg0: i32) -> (i32, i32) {
    %c0_i32 = arith.constant 0 : i32
    %c0_i32_0 = arith.constant 0 : i32
    %c0_i32_1 = arith.constant 0 : i32
    return %c0_i32, %c0_i32_0 : i32, i32
  }
  func.func @transform_5(%arg0: i32) -> (i32, i32) {
    %c0_i32 = arith.constant 0 : i32
    %c0_i32_0 = arith.constant 0 : i32
    %c0_i32_1 = arith.constant 0 : i32
    return %c0_i32, %c0_i32_0 : i32, i32
  }
  func.func @transform_6(%arg0: i32) -> (i32, i32) {
    %c0_i32 = arith.constant 0 : i32
    %c0_i32_0 = arith.constant 0 : i32
    %c0_i32_1 = arith.constant 0 : i32
    return %c0_i32, %c0_i32_0 : i32, i32
  }
  func.func @transform_7(%arg0: i32) -> (i32, i32) {
    %c0_i32 = arith.constant 0 : i32
    %c0_i32_0 = arith.constant 0 : i32
    %c0_i32_1 = arith.constant 0 : i32
    return %c0_i32, %c0_i32_0 : i32, i32
  }
  func.func @transform_8(%arg0: i32) -> (i32, i32) {
    %c0_i32 = arith.constant 0 : i32
    %c0_i32_0 = arith.constant 0 : i32
    %c0_i32_1 = arith.constant 0 : i32
    return %c0_i32, %c0_i32_0 : i32, i32
  }
  func.func @transform_9(%arg0: i32) -> (i32, i32) {
    %c0_i32 = arith.constant 0 : i32
    %c0_i32_0 = arith.constant 0 : i32
    %c0_i32_1 = arith.constant 0 : i32
    return %c0_i32, %c0_i32_0 : i32, i32
  }
  func.func @transform_10(%arg0: i32) -> (i32, i32) {
    %c0_i32 = arith.constant 0 : i32
    %c0_i32_0 = arith.constant 0 : i32
    %c0_i32_1 = arith.constant 0 : i32
    return %c0_i32, %c0_i32_0 : i32, i32
  }
  func.func @transform_11(%arg0: i32) -> (i32, i32) {
    %c0_i32 = arith.constant 0 : i32
    %c0_i32_0 = arith.constant 0 : i32
    %c0_i32_1 = arith.constant 0 : i32
    return %c0_i32, %c0_i32_0 : i32, i32
  }
  func.func @transform_12(%arg0: i32) -> (i32, i32) {
    %c0_i32 = arith.constant 0 : i32
    %c0_i32_0 = arith.constant 0 : i32
    %c0_i32_1 = arith.constant 0 : i32
    return %c0_i32, %c0_i32_0 : i32, i32
  }
  func.func @transform_13(%arg0: i32) -> (i32, i32) {
    %c0_i32 = arith.constant 0 : i32
    %c0_i32_0 = arith.constant 0 : i32
    %c0_i32_1 = arith.constant 0 : i32
    return %c0_i32, %c0_i32_0 : i32, i32
  }
  func.func @transform_14(%arg0: i32) -> (i32, i32) {
    %c0_i32 = arith.constant 0 : i32
    %c0_i32_0 = arith.constant 0 : i32
    %c0_i32_1 = arith.constant 0 : i32
    return %c0_i32, %c0_i32_0 : i32, i32
  }
  func.func @transform_15(%arg0: i32) -> (i32, i32) {
    %c0_i32 = arith.constant 0 : i32
    %c0_i32_0 = arith.constant 0 : i32
    %c0_i32_1 = arith.constant 0 : i32
    return %c0_i32, %c0_i32_0 : i32, i32
  }
  func.func @transform_16(%arg0: i32) -> (i32, i32) {
    %c0_i32 = arith.constant 0 : i32
    %c0_i32_0 = arith.constant 0 : i32
    %c0_i32_1 = arith.constant 0 : i32
    return %c0_i32, %c0_i32_0 : i32, i32
  }
  func.func @transform_17(%arg0: i32) -> (i32, i32) {
    %c0_i32 = arith.constant 0 : i32
    %c0_i32_0 = arith.constant 0 : i32
    %c0_i32_1 = arith.constant 0 : i32
    return %c0_i32, %c0_i32_0 : i32, i32
  }
  func.func @transform_18(%arg0: i32) -> (i32, i32) {
    %c0_i32 = arith.constant 0 : i32
    %c0_i32_0 = arith.constant 0 : i32
    %c0_i32_1 = arith.constant 0 : i32
    return %c0_i32, %c0_i32_0 : i32, i32
  }
  func.func @transform_19(%arg0: i32) -> (i32, i32) {
    %c0_i32 = arith.constant 0 : i32
    %c0_i32_0 = arith.constant 0 : i32
    %c0_i32_1 = arith.constant 0 : i32
    return %c0_i32, %c0_i32_0 : i32, i32
  }
  func.func @transform_20(%arg0: i32) -> (i32, i32) {
    %c0_i32 = arith.constant 0 : i32
    %c0_i32_0 = arith.constant 0 : i32
    %c0_i32_1 = arith.constant 0 : i32
    return %c0_i32, %c0_i32_0 : i32, i32
  }
  func.func @transform_21(%arg0: i32) -> (i32, i32) {
    %c0_i32 = arith.constant 0 : i32
    %c0_i32_0 = arith.constant 0 : i32
    %c0_i32_1 = arith.constant 0 : i32
    return %c0_i32, %c0_i32_0 : i32, i32
  }
  func.func @transform_22(%arg0: i32) -> (i32, i32) {
    %c0_i32 = arith.constant 0 : i32
    %c0_i32_0 = arith.constant 0 : i32
    %c0_i32_1 = arith.constant 0 : i32
    return %c0_i32, %c0_i32_0 : i32, i32
  }
  func.func @transform_23(%arg0: i32) -> (i32, i32) {
    %c0_i32 = arith.constant 0 : i32
    %c0_i32_0 = arith.constant 0 : i32
    %c0_i32_1 = arith.constant 0 : i32
    return %c0_i32, %c0_i32_0 : i32, i32
  }
  func.func @transform_24(%arg0: i32) -> (i32, i32) {
    %c0_i32 = arith.constant 0 : i32
    %c0_i32_0 = arith.constant 0 : i32
    %c0_i32_1 = arith.constant 0 : i32
    return %c0_i32, %c0_i32_0 : i32, i32
  }
  func.func @transform_25(%arg0: i32) -> (i32, i32) {
    %c0_i32 = arith.constant 0 : i32
    %c0_i32_0 = arith.constant 0 : i32
    %c0_i32_1 = arith.constant 0 : i32
    return %c0_i32, %c0_i32_0 : i32, i32
  }
  func.func @transform_26(%arg0: i32) -> (i32, i32, i32) {
    %c0_i32 = arith.constant 0 : i32
    %c0_i32_0 = arith.constant 0 : i32
    %c0_i32_1 = arith.constant 0 : i32
    return %arg0, %c0_i32, %c0_i32_0 : i32, i32, i32
  }
  func.func @transform_27(%arg0: i32) -> (i32, i32, i32) {
    %c0_i32 = arith.constant 0 : i32
    %c0_i32_0 = arith.constant 0 : i32
    %c0_i32_1 = arith.constant 0 : i32
    return %arg0, %c0_i32, %c0_i32_0 : i32, i32, i32
  }
  func.func @transform_28(%arg0: i32) -> (i32, i32, i32) {
    %c0_i32 = arith.constant 0 : i32
    %c0_i32_0 = arith.constant 0 : i32
    %c0_i32_1 = arith.constant 0 : i32
    return %arg0, %c0_i32, %c0_i32_0 : i32, i32, i32
  }
  func.func @transform_29(%arg0: i32) -> (i32, i32, i32) {
    %c0_i32 = arith.constant 0 : i32
    %c0_i32_0 = arith.constant 0 : i32
    %c0_i32_1 = arith.constant 0 : i32
    return %arg0, %c0_i32, %c0_i32_0 : i32, i32, i32
  }
}

</mosaic_0001>

<bundles_post_ra>
// kernel: tpu_custom_call.1
= control target key start
LH: loop header
LB: loop body
LE: loop exit
PB: predicated region body
PF: predicated region fallthrough
CT: control target
= control target key end

     0   :  { %s3612_s6 = smov 1   ;;  %s3613_s10 = smov 2   ;;  %s4321_s0 = inlined_call_operand.smem [shape: u32[30], index: -1, kind: input, shape index: {}] }
   0x1   :  { %s3669_s5 = sld [smem:[%s4321_s0]]   ;;  %s3614_s14 = smov 3  }
   0x2   :  { %s3674_s9 = sld [smem:[%s4321_s0 + %s3612_s6]]   ;;  %s3615_s18 = smov 4  }
   0x3   :  { %s3679_s13 = sld [smem:[%s4321_s0 + %s3613_s10]]   ;;  %s3616_s22 = smov 5  }
   0x4   :  { %s3684_s17 = sld [smem:[%s4321_s0 + %s3614_s14]]   ;;  %s3617_s26 = smov 6  }
   0x5   :  { %s3689_s21 = sld [smem:[%s4321_s0 + %s3615_s18]]   ;;  %s3618_s30 = smov 7  }
   0x6   :  { %s3694_s25 = sld [smem:[%s4321_s0 + %s3616_s22]]   ;;  %s3619_s4 = smov 8  }
   0x7   :  { %4354 = sst [smem:[#allocation49_spill]] %s3669_s5  ;;  %s3620_s10 = smov 9  }
   0x8   :  { %4355 = sst [smem:[#allocation50_spill]] %s3674_s9  ;;  %s3621_s15 = smov 10  }
   0x9   :  { %4356 = sst [smem:[#allocation51_spill]] %s3679_s13  ;;  %s3622_s20 = smov 11  }
   0xa   :  { %4357 = sst [smem:[#allocation52_spill]] %s3684_s17  ;;  %s3624_s1 = smov 13  }
   0xb   :  { %4358 = sst [smem:[#allocation53_spill]] %s3689_s21  ;;  %s3625_s7 = smov 14  }
   0xc   :  { %4359 = sst [smem:[#allocation54_spill]] %s3694_s25  ;;  %s3627_s22 = smov 16  }
   0xd   :  { %s3699_s29 = sld [smem:[%s4321_s0 + %s3617_s26]]   ;;  %s3623_s26 = smov 12  }
   0xe   :  { %s3704_s3 = sld [smem:[%s4321_s0 + %s3618_s30]]   ;;  %s3628_s28 = smov 17  }
   0xf   :  { %s3709_s8 = sld [smem:[%s4321_s0 + %s3619_s4]]   ;;  %s3638_s16 = smov 27  }
  0x10   :  { %s3714_s14 = sld [smem:[%s4321_s0 + %s3620_s10]]   ;;  %s3637_s10 = smov 26  }
  0x11   :  { %s3719_s19 = sld [smem:[%s4321_s0 + %s3621_s15]]   ;;  %s3626_s15 = smov 15  }
  0x12   :  { %s3724_s24 = sld [smem:[%s4321_s0 + %s3622_s20]]   ;;  %s3639_s23 = smov 28  }
  0x13   :  { %4360 = sst [smem:[#allocation55_spill]] %s3699_s29 }
  0x14   :  { %4361 = sst [smem:[#allocation56_spill]] %s3704_s3 }
  0x15   :  { %4362 = sst [smem:[#allocation57_spill]] %s3709_s8 }
  0x16   :  { %4363 = sst [smem:[#allocation58_spill]] %s3714_s14 }
  0x17   :  { %4364 = sst [smem:[#allocation59_spill]] %s3719_s19 }
  0x18   :  { %4365 = sst [smem:[#allocation60_spill]] %s3724_s24 }
  0x19   :  { %s3729_s30 = sld [smem:[%s4321_s0 + %s3623_s26]]  }
  0x1a   :  { %s3734_s6 = sld [smem:[%s4321_s0 + %s3624_s1]]   ;;  %s3640_s1 = smov 29  }
  0x1b   :  { %s3739_s12 = sld [smem:[%s4321_s0 + %s3625_s7]]   ;;  %s3629_s7 = smov 18  }
  0x1c   :  { %s3744_s20 = sld [smem:[%s4321_s0 + %s3626_s15]]   ;;  %s3630_s15 = smov 19  }
  0x1d   :  { %s3749_s27 = sld [smem:[%s4321_s0 + %s3627_s22]]   ;;  %s3631_s22 = smov 20  }
  0x1e   :  { %s3754_s4 = sld [smem:[%s4321_s0 + %s3628_s28]]   ;;  %s3632_s28 = smov 21  }
  0x1f   :  { %s3759_s17 = sld [smem:[%s4321_s0 + %s3629_s7]]   ;;  %s3633_s7 = smov 22  }
  0x20   :  { %4366 = sst [smem:[#allocation61_spill]] %s3734_s6 }
  0x21   :  { %4367 = sst [smem:[#allocation62_spill]] %s3739_s12 }
  0x22   :  { %4368 = sst [smem:[#allocation63_spill]] %s3744_s20 }
  0x23   :  { %4369 = sst [smem:[#allocation64_spill]] %s3749_s27 }
  0x24   :  { %4370 = sst [smem:[#allocation65_spill]] %s3754_s4 }
  0x25   :  { %4371 = sst [smem:[#allocation66_spill]] %s3759_s17 }
  0x26   :  { %s3764_s13 = sld [smem:[%s4321_s0 + %s3630_s15]]   ;;  %s3634_s15 = smov 23  }
  0x27   :  { %s3769_s27 = sld [smem:[%s4321_s0 + %s3631_s22]]   ;;  %s3635_s22 = smov 24  }
  0x28   :  { %s3774_s5 = sld [smem:[%s4321_s0 + %s3632_s28]]   ;;  %s3636_s28 = smov 25  }
  0x29   :  { %s3779_s4 = sld [smem:[%s4321_s0 + %s3633_s7]]  }
  0x2a   :  { %s3812_s12 = sld [smem:[%s4321_s0 + %s3640_s1]]  }
  0x2c   :  { %4372 = sst [smem:[#allocation67_spill]] %s3764_s13 }
  0x2d   :  { %4373 = sst [smem:[#allocation68_spill]] %s3769_s27 }
  0x2e   :  { %4374 = sst [smem:[#allocation69_spill]] %s3774_s5 }
  0x2f   :  { %4375 = sst [smem:[#allocation70_spill]] %s3779_s4 }
  0x30   :  { %s3784_s13 = sld [smem:[%s4321_s0 + %s3634_s15]]  }
  0x31   :  { %s3789_s27 = sld [smem:[%s4321_s0 + %s3635_s22]]  }
  0x32   :  { %s2393_s5 = sld [smem:[%s4321_s0 + %s3636_s28]]  }
  0x33   :  { %s3797_s4 = sld [smem:[%s4321_s0 + %s3637_s10]]  }
  0x34   :  { %4381 = sst [smem:[#allocation76_spill]] %s3812_s12 }
  0x36   :  { %4376 = sst [smem:[#allocation71_spill]] %s3784_s13 }
  0x37   :  { %4377 = sst [smem:[#allocation72_spill]] %s3789_s27 }
  0x38   :  { %s3802_s13 = sld [smem:[%s4321_s0 + %s3638_s16]]   ;;  %v65_v0 = vstv %s2393_s5 }
  0x39   :  { %4378 = sst [smem:[#allocation73_spill]] %s3797_s4  ;;  %66 = vst [vmem:[#allocation2] sm:$0x1] %v65_v0 }
  0x3a   :  { %s3807_s27 = sld [smem:[%s4321_s0 + %s3639_s23]]  }
  0x3e   :  { %4379 = sst [smem:[#allocation74_spill]] %s3802_s13 }
  0x40   :  { %4380 = sst [smem:[#allocation75_spill]] %s3807_s27 }
  0x41   :  { %67 = vsyncpa [#allocation4], 0 }
  0x42   :  { %69 = vsyncpa [#allocation4 + $0x1], 0 }
  0x43   :  { %70 = vsyncpa [#allocation7], 0 }
  0x44   :  { %72 = vsyncpa [#allocation7 + $0x1], 0 }
  0x45   :  { %73 = vsyncpa [#allocation10], 0 }
  0x46   :  { %75 = vsyncpa [#allocation10 + $0x1], 0 }
  0x47   :  { %76 = vsyncpa [#allocation13], 0 }
  0x48   :  { %77 = vsyncpa [#allocation16], 0 }
  0x49   :  { %78 = vsyncpa [#allocation19], 0 }
  0x4a   :  { %79 = vsyncpa [#allocation22], 0 }
  0x4b   :  { %80 = vsyncpa [#allocation25], 0 }
  0x4c   :  { %81 = vsyncpa [#allocation28], 0 }
  0x4d   :  { %82 = vsyncpa [#allocation31], 0 }
  0x4e   :  { %83 = vsyncpa [#allocation5], 0 }
  0x4f   :  { %85 = vsyncpa [#allocation5 + $0x1], 0 }
  0x50   :  { %86 = vsyncpa [#allocation35], 0 }
  0x51   :  { %88 = vsyncpa [#allocation35 + $0x1], 0  ;;  %s3814_s0 = smov 0   ;;  %s3816_s5 = smov 0  }
  0x52   :  { %s3818_s10 = smov 0   ;;  %s3820_s7 = smov 0  }
  0x53 LB: > { %s4382_s29 = sld [smem:[#allocation55_spill]]  ;;  %s3838_s16 = sadd.s32 4294967295, %s3610_s7   ;;  %s3610_s7 = sphi %s3820_s7, %s4441_s7   ;;  %s3606_s10 = sphi %s3818_s10, %s4440_s10   ;;  %s3602_s5 = sphi %s3816_s5, %s4439_s5   ;;  %s3598_s0 = sphi %s3814_s0, %s4438_s0  }
  0x54   : > { %s4383_s19 = sld [smem:[#allocation59_spill]]  ;;  %p2400_p0 = scmp.ge.s32.totalorder %s3610_s7, 1 }
  0x55   : > { %s4384_s8 = sld [smem:[#allocation57_spill]]  ;;  %p4344_p1 = scmp.eq.s32.totalorder %s3838_s16, 0 }
  0x56   : > { %s4385_s25 = sld [smem:[#allocation54_spill]]  ;;  %p769_p2 = scmp.lt.s32.totalorder %s3610_s7, 3 }
  0x57   : > { %s4386_s9 = sld [smem:[#allocation50_spill]]  ;;  %s3641_s18 = smov [#allocation11]  }
  0x58   : > { %s4387_s24 = sld [smem:[#allocation60_spill]]  ;;  %p3843_p3 = pnand %p2400_p0, %p769_p2 }
  0x59   : > { %s4388_s21 = sld [smem:[#allocation53_spill]]  ;;  %s3847_s23 = sshll.u32 %s3641_s18, 4  ;;  %s783_s23 = int_to_ptr.vmem [resolvable:$true] %s3847_s23 }
  0x5a   : > { %s4389_s20 = sld [smem:[#allocation63_spill]]  ;;  %p2683_p4 = pneg %p3843_p3 }
  0x5b   : > { %s4390_s17 = sld [smem:[#allocation66_spill]]  ;;  %s3642_s28 = smov [#allocation12]  }
  0x5c   : > { %s4391_s14 = sld [smem:[#allocation58_spill]]  ;;  %s795_s22 = sshll.u32 %s4385_s25, 4  ;;  %s3860_s22 = int_to_ptr.hbm [resolvable:$true] %s795_s22 }
  0x5d   : > { %s4392_s6 = sld [smem:[#allocation61_spill]]  ;;  %p3856_p6 = pnand %p2683_p4, %p4344_p1 }
  0x5e   : > { %s4393_s3 = sld [smem:[#allocation56_spill]]  ;;  %s3863_s2 = sshll.u32 %s3642_s28, 4  ;;  %s798_s2 = int_to_ptr.vmem [resolvable:$true] %s3863_s2 }
  0x5f   : > { %s780_s11 = sshll.u32 %s4388_s21, 4  ;;  %p3868_p8 = pneg %p3856_p6  ;;  %s3835_s11 = int_to_ptr.hbm [resolvable:$true] %s780_s11 }
  0x60   : > { %s4394_s15 = scalar_select %p3843_p3, 1, 0 }
  0x61   : > { %s2902_s18 = sshra.s32 %s3835_s11, 4  ;;  %s2909_s4 = scalar_lea.hbm %s4388_s21, 16  ;;  %s2903_s18 = int_to_ptr.hbm [resolvable:$true] %s2902_s18 }
  0x62   : > { %s2904_s13 = scalar_lea.hbm %s2903_s18, 16  ;;  %p2910_p11 = scmp.lt.s32.totalorder %s2903_s18, %s4388_s21 }
  0x63   : > { %p2905_p7 = scmp.ne.s32.totalorder %s2903_s18, %s2904_s13  ;;  %p2911_p12 = scmp.lt.s32.totalorder %s2909_s4, %s2904_s13 }
  0x64   : > { %s821_s1 = sshll.u32 %s4393_s3, 4  ;;  %s3883_s1 = int_to_ptr.hbm [resolvable:$true] %s821_s1 }
  0x65   : > { %p2907_p9 = pnand %p3868_p8, %p2905_p7  ;;  %p2912_p13 = por %p2911_p12, %p2910_p11 }
  0x67   : > { %p2908_p10 = pneg %p2907_p9 }
  0x69   : > { %p2913_p0 = pnand %p2912_p13, %p2908_p10 }
  0x6b   : > { %2916 = shalt.err (!%p2913_p0)
}
  0x6c   : > { %s4333_s28 = smov 64   ;;  %s4335_s27 = smov 4  }
  0x6d   : > { %2686 = dma.hbm_to_vmem [thread:$0]  (!%p3856_p6), %s3835_s11, 256, %s783_s23, [#allocation10], %s4333_s28, %s4333_s28, %s4335_s27  }
  0x6e   : > { %s2932_s13 = sshra.s32 %s3860_s22, 4  ;;  %s2939_s18 = scalar_lea.hbm %s4385_s25, 1  ;;  %s2933_s13 = int_to_ptr.hbm [resolvable:$true] %s2932_s13 }
  0x6f   : > { %s2934_s4 = scalar_lea.hbm %s2933_s13, 1  ;;  %p2940_p9 = scmp.lt.s32.totalorder %s2933_s13, %s4385_s25 }
  0x70   : > { %p2935_p2 = scmp.ne.s32.totalorder %s2933_s13, %s2934_s4  ;;  %p2941_p10 = scmp.lt.s32.totalorder %s2939_s18, %s2934_s4 }
  0x72   : > { %p2937_p4 = pnand %p2935_p2, %p3868_p8  ;;  %p2942_p11 = por %p2941_p10, %p2940_p9 }
  0x74   : > { %p2938_p7 = pneg %p2937_p4 }
  0x76   : > { %p2943_p12 = pnand %p2942_p11, %p2938_p7 }
  0x78   : > { %2946 = shalt.err (!%p2943_p12)
}
  0x79   : > { %2689 = dma.hbm_to_vmem [thread:$0]  (!%p3856_p6), %s3860_s22, 16, %s798_s2, [#allocation13]  }
  0x7a   : > { %s847_s11 = sshll.u32 %s4391_s14, 4  ;;  %s3645_s23 = smov [#allocation15]   ;;  %s3894_s11 = int_to_ptr.hbm [resolvable:$true] %s847_s11 }
  0x7b   : > { %s823_s28 = sshll.u32 %s3645_s23, 4  ;;  %s2962_s13 = sshra.s32 %s3883_s1, 4  ;;  %s824_s28 = int_to_ptr.vmem [resolvable:$true] %s823_s28  ;;  %s2963_s13 = int_to_ptr.hbm [resolvable:$true] %s2962_s13 }
  0x7c   : > { %s2964_s4 = scalar_lea.hbm %s2963_s13, 1  ;;  %s2969_s18 = scalar_lea.hbm %s4393_s3, 1 }
  0x7d   : > { %p2965_p13 = scmp.ne.s32.totalorder %s2963_s13, %s2964_s4  ;;  %p2970_p4 = scmp.lt.s32.totalorder %s2963_s13, %s4393_s3 }
  0x7e   : > { %p2971_p7 = scmp.lt.s32.totalorder %s2969_s18, %s2964_s4 }
  0x7f   : > { %p2967_p0 = pnand %p2965_p13, %p3868_p8 }
  0x80   : > { %p2972_p9 = por %p2971_p7, %p2970_p4 }
  0x81   : > { %p2968_p2 = pneg %p2967_p0 }
  0x83   : > { %p2973_p10 = pnand %p2972_p9, %p2968_p2 }
  0x85   : > { %2976 = shalt.err (!%p2973_p10)
}
  0x86   : > { %2695 = dma.hbm_to_vmem [thread:$0]  (!%p3856_p6), %s3883_s1, 16, %s824_s28, [#allocation16]  }
  0x87   : > { %s3646_s22 = smov [#allocation18]   ;;  %s873_s23 = sshll.u32 %s4387_s24, 4  ;;  %s3905_s23 = int_to_ptr.hbm [resolvable:$true] %s873_s23 }
  0x88   : > { %s849_s2 = sshll.u32 %s3646_s22, 4  ;;  %s2992_s13 = sshra.s32 %s3894_s11, 4  ;;  %s850_s2 = int_to_ptr.vmem [resolvable:$true] %s849_s2  ;;  %s2993_s13 = int_to_ptr.hbm [resolvable:$true] %s2992_s13 }
  0x89   : > { %s2994_s4 = scalar_lea.hbm %s2993_s13, 1  ;;  %s2999_s18 = scalar_lea.hbm %s4391_s14, 1 }
  0x8a   : > { %p2995_p11 = scmp.ne.s32.totalorder %s2993_s13, %s2994_s4  ;;  %p3000_p0 = scmp.lt.s32.totalorder %s2993_s13, %s4391_s14 }
  0x8b   : > { %p3001_p2 = scmp.lt.s32.totalorder %s2999_s18, %s2994_s4 }
  0x8c   : > { %p2997_p12 = pnand %p2995_p11, %p3868_p8 }
  0x8d   : > { %p3002_p4 = por %p3001_p2, %p3000_p0 }
  0x8e   : > { %p2998_p13 = pneg %p2997_p12 }
  0x90   : > { %p3003_p7 = pnand %p3002_p4, %p2998_p13 }
  0x92   : > { %3006 = shalt.err (!%p3003_p7)
}
  0x93   : > { %2701 = dma.hbm_to_vmem [thread:$0]  (!%p3856_p6), %s3894_s11, 16, %s850_s2, [#allocation19]  }
  0x94   : > { %s897_s1 = sshll.u32 %s4392_s6, 4  ;;  %s3647_s28 = smov [#allocation21]   ;;  %s3916_s1 = int_to_ptr.hbm [resolvable:$true] %s897_s1 }
  0x95   : > { %s875_s22 = sshll.u32 %s3647_s28, 4  ;;  %s3022_s13 = sshra.s32 %s3905_s23, 4  ;;  %s876_s22 = int_to_ptr.vmem [resolvable:$true] %s875_s22  ;;  %s3023_s13 = int_to_ptr.hbm [resolvable:$true] %s3022_s13 }
  0x96   : > { %s3024_s4 = scalar_lea.hbm %s3023_s13, 1  ;;  %s3029_s18 = scalar_lea.hbm %s4387_s24, 1 }
  0x97   : > { %p3025_p9 = scmp.ne.s32.totalorder %s3023_s13, %s3024_s4  ;;  %p3030_p12 = scmp.lt.s32.totalorder %s3023_s13, %s4387_s24 }
  0x98   : > { %p3031_p13 = scmp.lt.s32.totalorder %s3029_s18, %s3024_s4 }
  0x99   : > { %p3027_p10 = pnand %p3025_p9, %p3868_p8 }
  0x9a   : > { %p3032_p0 = por %p3031_p13, %p3030_p12 }
  0x9b   : > { %p3028_p11 = pneg %p3027_p10 }
  0x9d   : > { %p3033_p2 = pnand %p3032_p0, %p3028_p11 }
  0x9f   : > { %3036 = shalt.err (!%p3033_p2)
}
  0xa0   : > { %2707 = dma.hbm_to_vmem [thread:$0]  (!%p3856_p6), %s3905_s23, 16, %s876_s22, [#allocation22]  }
  0xa1   : > { %s3648_s11 = smov [#allocation24]   ;;  %s923_s28 = sshll.u32 %s4389_s20, 4  ;;  %s3927_s28 = int_to_ptr.hbm [resolvable:$true] %s923_s28 }
  0xa2   : > { %s899_s2 = sshll.u32 %s3648_s11, 4  ;;  %s3052_s13 = sshra.s32 %s3916_s1, 4  ;;  %s900_s2 = int_to_ptr.vmem [resolvable:$true] %s899_s2  ;;  %s3053_s13 = int_to_ptr.hbm [resolvable:$true] %s3052_s13 }
  0xa3   : > { %s3054_s4 = scalar_lea.hbm %s3053_s13, 1  ;;  %s3059_s18 = scalar_lea.hbm %s4392_s6, 1 }
  0xa4   : > { %p3055_p4 = scmp.ne.s32.totalorder %s3053_s13, %s3054_s4  ;;  %p3060_p10 = scmp.lt.s32.totalorder %s3053_s13, %s4392_s6 }
  0xa5   : > { %p3061_p11 = scmp.lt.s32.totalorder %s3059_s18, %s3054_s4 }
  0xa6   : > { %p3057_p7 = pnand %p3055_p4, %p3868_p8 }
  0xa7   : > { %p3062_p12 = por %p3061_p11, %p3060_p10 }
  0xa8   : > { %p3058_p9 = pneg %p3057_p7 }
  0xaa   : > { %p3063_p13 = pnand %p3062_p12, %p3058_p9 }
  0xac   : > { %3066 = shalt.err (!%p3063_p13)
}
  0xad   : > { %2713 = dma.hbm_to_vmem [thread:$0]  (!%p3856_p6), %s3916_s1, 16, %s900_s2, [#allocation25]  }
  0xae   : > { %s950_s23 = sshll.u32 %s4390_s17, 4  ;;  %s3649_s22 = smov [#allocation27]   ;;  %s3938_s23 = int_to_ptr.hbm [resolvable:$true] %s950_s23 }
  0xaf   : > { %s925_s11 = sshll.u32 %s3649_s22, 4  ;;  %s3082_s13 = sshra.s32 %s3927_s28, 4  ;;  %s926_s11 = int_to_ptr.vmem [resolvable:$true] %s925_s11  ;;  %s3083_s13 = int_to_ptr.hbm [resolvable:$true] %s3082_s13 }
  0xb0   : > { %s3084_s4 = scalar_lea.hbm %s3083_s13, 1  ;;  %s3089_s18 = scalar_lea.hbm %s4389_s20, 1 }
  0xb1   : > { %p3085_p0 = scmp.ne.s32.totalorder %s3083_s13, %s3084_s4  ;;  %p3090_p7 = scmp.lt.s32.totalorder %s3083_s13, %s4389_s20 }
  0xb2   : > { %p3091_p9 = scmp.lt.s32.totalorder %s3089_s18, %s3084_s4 }
  0xb3   : > { %p3087_p2 = pnand %p3085_p0, %p3868_p8 }
  0xb4   : > { %p3092_p10 = por %p3091_p9, %p3090_p7 }
  0xb5   : > { %p3088_p4 = pneg %p3087_p2 }
  0xb7   : > { %p3093_p11 = pnand %p3092_p10, %p3088_p4 }
  0xb9   : > { %3096 = shalt.err (!%p3093_p11)
}
  0xba   : > { %2719 = dma.hbm_to_vmem [thread:$0]  (!%p3856_p6), %s3927_s28, 16, %s926_s11, [#allocation28]  }
  0xbb   : > { %s3650_s1 = smov [#allocation30]   ;;  %s3112_s22 = sshra.s32 %s3938_s23, 4  ;;  %s3113_s22 = int_to_ptr.hbm [resolvable:$true] %s3112_s22 }
  0xbc   : > { %s952_s2 = sshll.u32 %s3650_s1, 4  ;;  %s3114_s27 = scalar_lea.hbm %s3113_s22, 1  ;;  %s953_s2 = int_to_ptr.vmem [resolvable:$true] %s952_s2 }
  0xbd   : > { %p3115_p12 = scmp.ne.s32.totalorder %s3113_s22, %s3114_s27  ;;  %s3119_s13 = scalar_lea.hbm %s4390_s17, 1 }
  0xbe   : > { %p3120_p2 = scmp.lt.s32.totalorder %s3113_s22, %s4390_s17  ;;  %p3121_p4 = scmp.lt.s32.totalorder %s3119_s13, %s3114_s27 }
  0xbf   : > { %p3117_p13 = pnand %p3115_p12, %p3868_p8 }
  0xc0   : > { %p3122_p7 = por %p3121_p4, %p3120_p2 }
  0xc1   : > { %p3118_p0 = pneg %p3117_p13 }
  0xc3   : > { %p3123_p9 = pnand %p3122_p7, %p3118_p0 }
  0xc5   : > { %3126 = shalt.err (!%p3123_p9)
}
  0xc6   : > { %2725 = dma.hbm_to_vmem [thread:$0]  (!%p3856_p6), %s3938_s23, 16, %s953_s2, [#allocation31]  }
  0xc7   : > { %s2399_s27 = sadd.s32 4294967294, %s3610_s7   ;;  %s3958_s28 = sadd.s32 1, %s3610_s7  }
  0xc8   : > { %s98_s11 = ssub.s32 %s3610_s7, %s3958_s28  ;;  %s101_s4 = sadd.s32 1, %s3606_s10 }
  0xc9   : > { %p99_p10 = scmp.eq.s32.totalorder %s98_s11, 0  ;;  %p108_p11 = scmp.ne.s32.totalorder %s3606_s10, %s3602_s5 }
  0xca   : > { %p109_p12 = scmp.eq.s32.totalorder %s3610_s7, 0  ;;  %p114_p13 = scmp.ne.s32.totalorder %s3602_s5, %s3598_s0 }
  0xcb   : > { %s3969_s18 = scalar_select %p99_p10, %s3606_s10, %s101_s4  }
  0xcc   : > { %p110_p0 = por %p109_p12, %p108_p11  ;;  %p3973_p2 = por %p4344_p1, %p114_p13 }
  0xcd   : > { %p678_p4 = scmp.eq.s32.totalorder %s3838_s16, 1  ;;  %p684_p7 = scmp.eq.s32.totalorder %s2399_s27, 1 }
  0xce   : > { %p2764_p9 = scmp.lt.s32.totalorder %s3610_s7, 2  ;;  %s3980_s1 = sand.u32 1, %s3606_s10  }
  0xcf   : > { %p3982_p5 = por %p678_p4, %p108_p11  ;;  %p3986_p3 = por %p684_p7, %p114_p13 }
  0xd0   : > { %p3990_p10 = pnand %p2764_p9, %p110_p0  ;;  %s4345_s27 = sand.u32 1, %s3610_s7  }
  0xd1   : > { %s1018_s11 = scalar_lea.hbm %s4386_s9, %s3610_s7  ;;  %s1015_s3 = scalar_lea.vmem [#allocation6], %s3980_s1 }
  0xd2   : > { %s1020_s4 = sshll.u32 %s1018_s11, 4  ;;  %s1022_s6 = sshll.u32 %s1015_s3, 4  ;;  %s1021_s4 = int_to_ptr.hbm [resolvable:$true] %s1020_s4  ;;  %s1023_s6 = int_to_ptr.vmem [resolvable:$true] %s1022_s6 }
  0xd3   : > { %s4000_s14 = scalar_lea.sflag [#allocation7], %s4345_s27  ;;  %s3142_s17 = sshra.s32 %s1021_s4, 4  ;;  %s3143_s17 = int_to_ptr.hbm [resolvable:$true] %s3142_s17 }
  0xd4   : > { %s3144_s20 = scalar_lea.hbm %s3143_s17, 1  ;;  %p3146_p12 = pneg %p3990_p10 }
  0xd5   : > { %p3145_p11 = scmp.ne.s32.totalorder %s3143_s17, %s3144_s20  ;;  %s3149_s21 = scalar_lea.hbm %s4386_s9, 2 }
  0xd6   : > { %p3150_p4 = scmp.lt.s32.totalorder %s3143_s17, %s4386_s9  ;;  %p3151_p7 = scmp.lt.s32.totalorder %s3149_s21, %s3144_s20 }
  0xd7   : > { %p3147_p13 = pnand %p3146_p12, %p3145_p11 }
  0xd8   : > { %p3152_p9 = por %p3151_p7, %p3150_p4 }
  0xd9   : > { %p3148_p0 = pneg %p3147_p13 }
  0xdb   : > { %p3153_p1 = pnand %p3152_p9, %p3148_p0 }
  0xdd   : > { %3156 = shalt.err (!%p3153_p1)
}
  0xde   : > { %2735 = dma.hbm_to_vmem [thread:$0]  (!%p3990_p10), %s1021_s4, 16, %s1023_s6, %s4000_s14  }
  0xdf   : > { %s806_s3 = sshll.u32 %s4382_s29, 4  ;;  %s3651_s11 = smov [#allocation14]   ;;  %s807_s3 = int_to_ptr.hbm [resolvable:$true] %s806_s3 }
  0xe0   : > { %s808_s27 = sshll.u32 %s3651_s11, 4  ;;  %s832_s24 = sshll.u32 %s4384_s8, 4  ;;  %s809_s27 = int_to_ptr.vmem [resolvable:$true] %s808_s27  ;;  %s4014_s24 = int_to_ptr.hbm [resolvable:$true] %s832_s24 }
  0xe1   : > { %s3172_s17 = sshra.s32 %s807_s3, 4  ;;  %s3179_s20 = scalar_lea.hbm %s4382_s29, 16  ;;  %s3173_s17 = int_to_ptr.hbm [resolvable:$true] %s3172_s17 }
  0xe2   : > { %s3174_s21 = scalar_lea.hbm %s3173_s17, 16  ;;  %p3180_p0 = scmp.lt.s32.totalorder %s3173_s17, %s4382_s29 }
  0xe3   : > { %p3175_p1 = scmp.ne.s32.totalorder %s3173_s17, %s3174_s21  ;;  %p3181_p4 = scmp.lt.s32.totalorder %s3179_s20, %s3174_s21 }
  0xe5   : > { %p3177_p11 = pnand %p3175_p1, %p3868_p8  ;;  %p3182_p7 = por %p3181_p4, %p3180_p0 }
  0xe7   : > { %p3178_p13 = pneg %p3177_p11 }
  0xe9   : > { %p3183_p9 = pnand %p3182_p7, %p3178_p13 }
  0xeb   : > { %3186 = shalt.err (!%p3183_p9)
}
  0xec   : > { %s4401_s6 = smov 4   ;;  %s4402_s4 = smov 64  }
  0xed   : > { %2692 = dma.hbm_to_vmem [thread:$0]  (!%p3856_p6), %s807_s3, 256, %s809_s27, [#allocation13], %s4402_s4, %s4402_s4, %s4401_s6  }
  0xee   : > { %s858_s11 = sshll.u32 %s4383_s19, 4  ;;  %s3652_s9 = smov [#allocation17]   ;;  %s4026_s11 = int_to_ptr.hbm [resolvable:$true] %s858_s11 }
  0xef   : > { %s834_s25 = sshll.u32 %s3652_s9, 4  ;;  %s3202_s17 = sshra.s32 %s4014_s24, 4  ;;  %s835_s25 = int_to_ptr.vmem [resolvable:$true] %s834_s25  ;;  %s3203_s17 = int_to_ptr.hbm [resolvable:$true] %s3202_s17 }
  0xf0   : > { %s3204_s21 = scalar_lea.hbm %s3203_s17, 16  ;;  %s3209_s20 = scalar_lea.hbm %s4384_s8, 16 }
  0xf1   : > { %p3205_p1 = scmp.ne.s32.totalorder %s3203_s17, %s3204_s21  ;;  %p3210_p0 = scmp.lt.s32.totalorder %s3203_s17, %s4384_s8 }
  0xf2   : > { %p3211_p4 = scmp.lt.s32.totalorder %s3209_s20, %s3204_s21 }
  0xf3   : > { %p3207_p11 = pnand %p3205_p1, %p3868_p8 }
  0xf4   : > { %p3212_p7 = por %p3211_p4, %p3210_p0 }
  0xf5   : > { %p3208_p13 = pneg %p3207_p11 }
  0xf7   : > { %p3213_p9 = pnand %p3212_p7, %p3208_p13 }
  0xf9   : > { %3216 = shalt.err (!%p3213_p9)
}
  0xfa   : > { %2698 = dma.hbm_to_vmem [thread:$0]  (!%p3856_p6), %s4014_s24, 256, %s835_s25, [#allocation16], %s4402_s4, %s4402_s4, %s4401_s6  }
  0xfb   : > { %s3653_s9 = smov [#allocation20]   ;;  %s885_s3 = sshll.u32 %s3729_s30, 4  ;;  %s4040_s3 = int_to_ptr.hbm [resolvable:$true] %s885_s3 }
  0xfc   : > { %s860_s27 = sshll.u32 %s3653_s9, 4  ;;  %s3232_s17 = sshra.s32 %s4026_s11, 4  ;;  %s861_s27 = int_to_ptr.vmem [resolvable:$true] %s860_s27  ;;  %s3233_s17 = int_to_ptr.hbm [resolvable:$true] %s3232_s17 }
  0xfd   : > { %s3234_s21 = scalar_lea.hbm %s3233_s17, 16  ;;  %s3239_s20 = scalar_lea.hbm %s4383_s19, 16 }
  0xfe   : > { %p3235_p1 = scmp.ne.s32.totalorder %s3233_s17, %s3234_s21  ;;  %p3240_p0 = scmp.lt.s32.totalorder %s3233_s17, %s4383_s19 }
  0xff   : > { %p3241_p4 = scmp.lt.s32.totalorder %s3239_s20, %s3234_s21 }
 0x100   : > { %p3237_p11 = pnand %p3235_p1, %p3868_p8 }
 0x101   : > { %p3242_p7 = por %p3241_p4, %p3240_p0 }
 0x102   : > { %p3238_p13 = pneg %p3237_p11 }
 0x104   : > { %p3243_p9 = pnand %p3242_p7, %p3238_p13 }
 0x106   : > { %3246 = shalt.err (!%p3243_p9)
}
 0x107   : > { %s4403_s25 = sld [smem:[#allocation62_spill]]  ;;  %s3654_s9 = smov [#allocation23]  }
 0x108   : > { %2704 = dma.hbm_to_vmem [thread:$0]  (!%p3856_p6), %s4026_s11, 256, %s861_s27, [#allocation19], %s4402_s4, %s4402_s4, %s4401_s6  }
 0x109   : > { %s887_s8 = sshll.u32 %s3654_s9, 4  ;;  %s3262_s17 = sshra.s32 %s4040_s3, 4  ;;  %s888_s8 = int_to_ptr.vmem [resolvable:$true] %s887_s8  ;;  %s3263_s17 = int_to_ptr.hbm [resolvable:$true] %s3262_s17 }
 0x10a   : > { %s3264_s21 = scalar_lea.hbm %s3263_s17, 1  ;;  %s3269_s20 = scalar_lea.hbm %s3729_s30, 1 }
 0x10b   : > { %p3265_p1 = scmp.ne.s32.totalorder %s3263_s17, %s3264_s21  ;;  %p3270_p0 = scmp.lt.s32.totalorder %s3263_s17, %s3729_s30 }
 0x10c   : > { %p3271_p4 = scmp.lt.s32.totalorder %s3269_s20, %s3264_s21 }
 0x10d   : > { %s908_s24 = sshll.u32 %s4403_s25, 4  ;;  %p3267_p11 = pnand %p3265_p1, %p3868_p8  ;;  %s4054_s24 = int_to_ptr.hbm [resolvable:$true] %s908_s24 }
 0x10e   : > { %p3272_p7 = por %p3271_p4, %p3270_p0 }
 0x10f   : > { %p3268_p13 = pneg %p3267_p11 }
 0x111   : > { %p3273_p9 = pnand %p3272_p7, %p3268_p13 }
 0x113   : > { %3276 = shalt.err (!%p3273_p9)
}
 0x114   : > { %s4404_s11 = sld [smem:[#allocation65_spill]]  ;;  %s3655_s27 = smov [#allocation26]  }
 0x115   : > { %2710 = dma.hbm_to_vmem [thread:$0]  (!%p3856_p6), %s4040_s3, 16, %s888_s8, [#allocation22]  }
 0x116   : > { %s910_s9 = sshll.u32 %s3655_s27, 4  ;;  %s3292_s17 = sshra.s32 %s4054_s24, 4  ;;  %s911_s9 = int_to_ptr.vmem [resolvable:$true] %s910_s9  ;;  %s3293_s17 = int_to_ptr.hbm [resolvable:$true] %s3292_s17 }
 0x117   : > { %s3294_s21 = scalar_lea.hbm %s3293_s17, 16  ;;  %s3299_s20 = scalar_lea.hbm %s4403_s25, 16 }
 0x118   : > { %p3295_p1 = scmp.ne.s32.totalorder %s3293_s17, %s3294_s21  ;;  %p3300_p0 = scmp.lt.s32.totalorder %s3293_s17, %s4403_s25 }
 0x119   : > { %p3301_p4 = scmp.lt.s32.totalorder %s3299_s20, %s3294_s21 }
 0x11a   : > { %s938_s19 = sshll.u32 %s4404_s11, 4  ;;  %p3297_p11 = pnand %p3295_p1, %p3868_p8  ;;  %s4065_s19 = int_to_ptr.hbm [resolvable:$true] %s938_s19 }
 0x11b   : > { %p3302_p7 = por %p3301_p4, %p3300_p0 }
 0x11c   : > { %p3298_p13 = pneg %p3297_p11 }
 0x11e   : > { %p3303_p9 = pnand %p3302_p7, %p3298_p13 }
 0x120   : > { %3306 = shalt.err (!%p3303_p9)
}
 0x121   : > { %s4405_s8 = sld [smem:[#allocation67_spill]]  ;;  %s3656_s27 = smov [#allocation29]  }
 0x122   : > { %2716 = dma.hbm_to_vmem [thread:$0]  (!%p3856_p6), %s4054_s24, 256, %s911_s9, [#allocation25], %s4402_s4, %s4402_s4, %s4401_s6  }
 0x123   : > { %s940_s29 = sshll.u32 %s3656_s27, 4  ;;  %s3322_s17 = sshra.s32 %s4065_s19, 4  ;;  %s941_s29 = int_to_ptr.vmem [resolvable:$true] %s940_s29  ;;  %s3323_s17 = int_to_ptr.hbm [resolvable:$true] %s3322_s17 }
 0x124   : > { %s3324_s21 = scalar_lea.hbm %s3323_s17, 1  ;;  %s3329_s20 = scalar_lea.hbm %s4404_s11, 1 }
 0x125   : > { %p3325_p1 = scmp.ne.s32.totalorder %s3323_s17, %s3324_s21  ;;  %p3330_p0 = scmp.lt.s32.totalorder %s3323_s17, %s4404_s11 }
 0x126   : > { %p3331_p4 = scmp.lt.s32.totalorder %s3329_s20, %s3324_s21 }
 0x127   : > { %s962_s3 = sshll.u32 %s4405_s8, 4  ;;  %p3327_p11 = pnand %p3325_p1, %p3868_p8  ;;  %s4079_s3 = int_to_ptr.hbm [resolvable:$true] %s962_s3 }
 0x128   : > { %p3332_p7 = por %p3331_p4, %p3330_p0 }
 0x129   : > { %p3328_p13 = pneg %p3327_p11 }
 0x12b   : > { %p3333_p9 = pnand %p3332_p7, %p3328_p13 }
 0x12d   : > { %3336 = shalt.err (!%p3333_p9)
}
 0x12e   : > { %2722 = dma.hbm_to_vmem [thread:$0]  (!%p3856_p6), %s4065_s19, 16, %s941_s29, [#allocation28]  }
 0x12f   : > { %s3657_s6 = smov [#allocation32]   ;;  %s2417_s24 = sshll.u32 %s3980_s1, 3 }
 0x130   : > { %s964_s4 = sshll.u32 %s3657_s6, 4  ;;  %s3352_s9 = sshra.s32 %s4079_s3, 4  ;;  %s965_s4 = int_to_ptr.vmem [resolvable:$true] %s964_s4  ;;  %s3353_s9 = int_to_ptr.hbm [resolvable:$true] %s3352_s9 }
 0x131   : > { %s3354_s27 = scalar_lea.hbm %s3353_s9, 1  ;;  %s3359_s17 = scalar_lea.hbm %s4405_s8, 1 }
 0x132   : > { %p3355_p1 = scmp.ne.s32.totalorder %s3353_s9, %s3354_s27  ;;  %p3360_p0 = scmp.lt.s32.totalorder %s3353_s9, %s4405_s8 }
 0x133   : > { %p3361_p4 = scmp.lt.s32.totalorder %s3359_s17, %s3354_s27 }
 0x134   : > { %p3357_p11 = pnand %p3355_p1, %p3868_p8 }
 0x135   : > { %p3362_p7 = por %p3361_p4, %p3360_p0 }
 0x136   : > { %p3358_p13 = pneg %p3357_p11 }
 0x138   : > { %p3363_p9 = pnand %p3362_p7, %p3358_p13 }
 0x13a   : > { %3366 = shalt.err (!%p3363_p9)
}
 0x13b   : > { %s4406_s29 = sld [smem:[#allocation49_spill]]  ;;  %s2418_s19 = sshll.u32 %s3610_s7, 3 }
 0x13c   : > { %2728 = dma.hbm_to_vmem [thread:$0]  (!%p3856_p6), %s4079_s3, 16, %s965_s4, [#allocation31]  }
 0x13d   : > { %s997_s21 = scalar_lea.vmem [#allocation3], %s2417_s24  ;;  %s994_s9 = scalar_lea.sflag [#allocation4], %s3980_s1 }
 0x13e   : > { %s1005_s20 = sshll.u32 %s997_s21, 4  ;;  %s1006_s20 = int_to_ptr.vmem [resolvable:$true] %s1005_s20 }
 0x141   : > { %s1001_s12 = scalar_lea.hbm %s4406_s29, %s2418_s19  ;;  %s3389_s26 = scalar_lea.hbm %s4406_s29, 16 }
 0x142   : > { %s1003_s6 = sshll.u32 %s1001_s12, 4  ;;  %s1004_s6 = int_to_ptr.hbm [resolvable:$true] %s1003_s6 }
 0x143   : > { %s3382_s27 = sshra.s32 %s1004_s6, 4  ;;  %s3383_s27 = int_to_ptr.hbm [resolvable:$true] %s3382_s27 }
 0x144   : > { %s3384_s17 = scalar_lea.hbm %s3383_s27, 8  ;;  %p3390_p13 = scmp.lt.s32.totalorder %s3383_s27, %s4406_s29 }
 0x145   : > { %p3385_p8 = scmp.ne.s32.totalorder %s3383_s27, %s3384_s17  ;;  %p3391_p6 = scmp.lt.s32.totalorder %s3389_s26, %s3384_s17 }
 0x147   : > { %p3387_p1 = pnand %p3385_p8, %p3146_p12  ;;  %p3392_p0 = por %p3391_p6, %p3390_p13 }
 0x149   : > { %p3388_p11 = pneg %p3387_p1 }
 0x14b   : > { %p3393_p4 = pnand %p3392_p0, %p3388_p11 }
 0x14d   : > { %3396 = shalt.err (!%p3393_p4)
}
 0x14e   : > { %s4407_s3 = sld [smem:[#allocation51_spill]]  ;;  %s1032_s24 = scalar_lea.vmem [#allocation8], %s3980_s1 }
 0x14f   : > { %2732 = dma.hbm_to_vmem [thread:$0]  (!%p3990_p10), %s1004_s6, 128, %s1006_s20, %s994_s9  }
 0x150   : > { %s1039_s19 = sshll.u32 %s1032_s24, 4  ;;  %s1040_s19 = int_to_ptr.vmem [resolvable:$true] %s1039_s19 }
 0x154   : > { %s1035_s4 = scalar_lea.hbm %s4407_s3, %s3610_s7  ;;  %s3419_s17 = scalar_lea.hbm %s4407_s3, 2 }
 0x155   : > { %s1037_s12 = sshll.u32 %s1035_s4, 4  ;;  %s1038_s12 = int_to_ptr.hbm [resolvable:$true] %s1037_s12 }
 0x156   : > { %s3412_s21 = sshra.s32 %s1038_s12, 4  ;;  %s3413_s21 = int_to_ptr.hbm [resolvable:$true] %s3412_s21 }
 0x157   : > { %s3414_s27 = scalar_lea.hbm %s3413_s21, 1  ;;  %p3420_p1 = scmp.lt.s32.totalorder %s3413_s21, %s4407_s3 }
 0x158   : > { %p3415_p7 = scmp.ne.s32.totalorder %s3413_s21, %s3414_s27  ;;  %p3421_p11 = scmp.lt.s32.totalorder %s3419_s17, %s3414_s27 }
 0x15a   : > { %p3417_p9 = pnand %p3415_p7, %p3146_p12  ;;  %p3422_p13 = por %p3421_p11, %p3420_p1 }
 0x15c   : > { %p3418_p8 = pneg %p3417_p9 }
 0x15e   : > { %p3423_p6 = pnand %p3422_p13, %p3418_p8 }
 0x160   : > { %3426 = shalt.err (!%p3423_p6)
}
 0x161   : > { %s4408_s20 = sld [smem:[#allocation52_spill]]  ;;  %s1049_s9 = scalar_lea.vmem [#allocation9], %s3980_s1 }
 0x162   : > { %2738 = dma.hbm_to_vmem [thread:$0]  (!%p3990_p10), %s1038_s12, 16, %s1040_s19, %s4000_s14  }
 0x163   : > { %s1056_s26 = sshll.u32 %s1049_s9, 4  ;;  %s4409_s24 = sand.u32 1, %s3610_s7   ;;  %s1057_s26 = int_to_ptr.vmem [resolvable:$true] %s1056_s26 }
 0x164   : > { %s1047_s21 = scalar_lea.sflag [#allocation10], %s4409_s24 }
 0x167   : > { %s1052_s6 = scalar_lea.hbm %s4408_s20, %s3610_s7  ;;  %s3449_s3 = scalar_lea.hbm %s4408_s20, 2 }
 0x168   : > { %s1054_s4 = sshll.u32 %s1052_s6, 4  ;;  %s1055_s4 = int_to_ptr.hbm [resolvable:$true] %s1054_s4 }
 0x169   : > { %s3442_s27 = sshra.s32 %s1055_s4, 4  ;;  %s3443_s27 = int_to_ptr.hbm [resolvable:$true] %s3442_s27 }
 0x16a   : > { %s3444_s17 = scalar_lea.hbm %s3443_s27, 1  ;;  %p3450_p9 = scmp.lt.s32.totalorder %s3443_s27, %s4408_s20 }
 0x16b   : > { %p3445_p0 = scmp.ne.s32.totalorder %s3443_s27, %s3444_s17  ;;  %p3451_p8 = scmp.lt.s32.totalorder %s3449_s3, %s3444_s17 }
 0x16d   : > { %p3447_p4 = pnand %p3445_p0, %p3146_p12  ;;  %p3452_p1 = por %p3451_p8, %p3450_p9 }
 0x16f   : > { %p3448_p7 = pneg %p3447_p4 }
 0x171   : > { %p3453_p11 = pnand %p3452_p1, %p3448_p7 }
 0x173   : > { %3456 = shalt.err (!%p3453_p11)
}
 0x174   : > { %2741 = dma.hbm_to_vmem [thread:$0]  (!%p3990_p10), %s1055_s4, 16, %s1057_s26, %s1047_s21  }
 0x175   : > { %p4410_p13 = scmp.ne.s32.totalorder %s4394_s15, 0 }
 0x176   : > { %s4134_s14 = sand.u32 (!%p4410_p13), 1, %s3602_s5  }
 0x177   : > { %1065 = sbr.rel (%p4410_p13) target bundleno = 2476 (0x9ac), region = 124  ;;  %s2420_s1 = sshll.u32 (!%p4410_p13), %s4134_s14, 3 }
 0x178   : > { %s1068_s19 = scalar_lea.sflag (!%p4410_p13), [#allocation4], %s4134_s14  ;;  %s4138_s12 = scalar_lea.vmem (!%p4410_p13), [#allocation3], %s2420_s1 }
 0x17c   : > { %3545 = dma.done.wait (%p3973_p2), %s1068_s19, 128  }
 0x17d   : > { %3547 = vsyncadd (%p3973_p2), %s1068_s19, 4294967168  ;;  %s1077_s15 = sand.u32 1, %s3838_s16   ;;  %s1080_s3 = scalar_lea.vmem [#allocation6], %s4134_s14 }
 0x17e   : > { %s1078_s13 = scalar_lea.sflag [#allocation7], %s1077_s15 }
 0x17f   : > { %3549 = dma.done.wait (%p3973_p2), %s1078_s13, 32  }
 0x180   : > { %3551 = vsyncadd (%p3973_p2), %s1078_s13, 4294967264  ;;  %s1089_s6 = scalar_lea.vmem [#allocation8], %s4134_s14  ;;  %s1096_s9 = scalar_lea.sflag [#allocation10], %s1077_s15 }
 0x181   : > { %s1098_s26 = scalar_lea.vmem [#allocation9], %s4134_s14 }
 0x182   : > { %3553 = dma.done.wait (%p3973_p2), %s1096_s9, 16  }
 0x183   : > { %3555 = vsyncadd (%p3973_p2), %s1096_s9, 4294967280  ;;  %p4411_p10 = scmp.eq.s32.totalorder %s3838_s16, 0 }
 0x185   : > { %3557 = dma.done.wait (%p4411_p10), [#allocation10], 256   ;;  %p4412_p12 = pmov %p4411_p10 }
 0x186   : > { %p4413_p6 = pmov %p4411_p10 }
 0x187   : > { %3559 = vsyncadd (%p4412_p12), [#allocation10], 4294967040 }
 0x188   : > { %3561 = dma.done.wait (%p4413_p6), [#allocation13], 272   ;;  %p4414_p0 = pmov %p4413_p6 }
 0x18a   : > { %3563 = vsyncadd (%p4414_p0), [#allocation13], 4294967024  ;;  %p4415_p4 = pmov %p4414_p0 }
 0x18b   : > { %p4416_p7 = pmov %p4414_p0 }
 0x18c   : > { %3565 = dma.done.wait (%p4415_p4), [#allocation16], 272  }
 0x18d   : > { %3567 = vsyncadd (%p4416_p7), [#allocation16], 4294967024  ;;  %p4417_p2 = pmov %p4414_p0 }
 0x18e   : > { %p4418_p9 = pmov %p4414_p0 }
 0x18f   : > { %3569 = dma.done.wait (%p4417_p2), [#allocation19], 272  }
 0x190   : > { %3571 = vsyncadd (%p4418_p9), [#allocation19], 4294967024  ;;  %p4419_p8 = pmov %p4414_p0 }
 0x191   : > { %p4420_p1 = pmov %p4414_p0 }
 0x192   : > { %3573 = dma.done.wait (%p4419_p8), [#allocation22], 32  }
 0x193   : > { %3575 = vsyncadd (%p4420_p1), [#allocation22], 4294967264  ;;  %p4421_p11 = pmov %p4414_p0 }
 0x194   : > { %p4422_p13 = pmov %p4414_p0 }
 0x195   : > { %3577 = dma.done.wait (%p4421_p11), [#allocation25], 272  }
 0x196   : > { %3579 = vsyncadd (%p4422_p13), [#allocation25], 4294967024  ;;  %p4423_p10 = pmov %p4414_p0 }
 0x197   : > { %p4424_p12 = pmov %p4414_p0 }
 0x198   : > { %3581 = dma.done.wait (%p4423_p10), [#allocation28], 32  }
 0x199   : > { %3583 = vsyncadd (%p4424_p12), [#allocation28], 4294967264  ;;  %p4425_p6 = pmov %p4414_p0 }
 0x19b   : > { %3585 = dma.done.wait (%p4425_p6), [#allocation31], 32  }
 0x19c   : > { %3587 = vsyncadd (%p4414_p0), [#allocation31], 4294967264  ;;  %v2580_v1 = vld [vmem:[#allocation11 + $0x8] sm:$0xff]  ;;  %v2582_v2 = vld [vmem:[#allocation14 + $0x8] sm:$0xff]  ;;  %vm1307_vm0 = vcmask 261120   ;;  %vm1418_vm1 = vcmask 64512  }
 0x19d   : > { %v2579_v3 = vld [vmem:[#allocation11] sm:$0xff]  ;;  %v2581_v4 = vld [vmem:[#allocation14] sm:$0xff]  ;;  %1317 = vmatpush.bf16.msra.mxu0 %v2580_v1  ;;  %1350 = vmatpush.bf16.msra.mxu1 %v2582_v2  ;;  %v2863_v10 = vld [vmem:[#allocation12] ss:$0 sm:$0xff]  ;;  %vm1435_vm2 = vcmask 1043456   ;;  %v3658_v55 = vmov 32.0  }
 0x19e   : > { %v4189_v5 = vld [vmem:[%s4138_s12] sm:$0xff]  ;;  %v2864_v7 = vld [vmem:[#allocation15] ss:$0 sm:$0xff]  ;;  %v1283_v20 = vld [vmem:[%s1080_s3] sm:$0x1]  ;;  %s4426_s23 = sld [smem:[#allocation64_spill]] }
 0x19f   : > { %v1286_v6 = vpack.c.bf16 %v4189_v5, %v4189_v5  ;;  %v2584_v18 = vld [vmem:[#allocation17 + $0x8] sm:$0xff]  ;;  %v2583_v19 = vld [vmem:[#allocation17] sm:$0xff]  ;;  %v2467_v21 = vadd.f32 -1.0, %v1283_v20  ;;  %v2865_v36 = vld [vmem:[#allocation18] ss:$0 sm:$0xff]  ;;  %s4427_s4 = sld [smem:[#allocation68_spill]] }
 0x1a0   : > { %1383 = vmatpush.bf16.msra.mxu2 %v2584_v18  ;;  %v2586_v40 = vld [vmem:[#allocation20 + $0x8] sm:$0xff]  ;;  %v2585_v45 = vld [vmem:[#allocation20] sm:$0xff]  ;;  %v2866_v49 = vld [vmem:[#allocation21] ss:$0 sm:$0xff]  ;;  %s4428_s24 = sld [smem:[#allocation70_spill]]  ;;  %p1273_p4 = scmp.lt.s32.totalorder %s3838_s16, 1 }
 0x1a1   : > { %1318 = vmatpush.bf16.msra.mxu0 %v2579_v3  ;;  %1351 = vmatpush.bf16.msra.mxu1 %v2581_v4  ;;  %v1413_v22 = vmul.f32 1e+09, %v2467_v21  ;;  %v2588_v3 = vld [vmem:[#allocation26 + $0x8] sm:$0xff]  ;;  %v2587_v4 = vld [vmem:[#allocation26] sm:$0xff]  ;;  %v2868_v18 = vld [vmem:[#allocation24] ss:$0 sm:$0xff] }
 0x1a2   : > { %s4429_s21 = sld [smem:[#allocation69_spill]]  ;;  %vm1903_vm11 = vcmask 56320   ;;  %s2436_s15 = sshll.u32 %s4134_s14, 2  ;;  %vm1911_vm12 = vcmask 52224  }
 0x1a3   : > { %v1415_v23 = vperm.slane %v1413_v22, 0  ;;  %s4430_s27 = sld [smem:[#allocation75_spill]]  ;;  %s4273_s3 = scalar_lea.vmem [#allocation33], %s2436_s15 }
 0x1a4   : > { %2447 = vmatmul.msk.bf16.vlgmr.msra.gmra.mxu0 %vm1307_vm0, %v1286_v6  ;;  %2456 = vmatmul.msk.bf16.vlgmr.msra.gmra.mxu1 %vm1307_vm0, %v1286_v6  ;;  %v2595_v22 = vld [vmem:[%s4426_s23 + $0x30] sm:$0xff]  ;;  %s4431_s17 = sld [smem:[#allocation71_spill]]  ;;  %s2576_s9 = sshll.u32 %s3838_s16, 2 }
 0x1a5   : > { %1384 = vmatpush.bf16.msra.mxu2 %v2583_v19  ;;  %1482 = vmatpush.bf16.msrb.mxu1 %v2586_v40  ;;  %s4261_s1 = scalar_select %p1273_p4, %s3838_s16, 1 }
 0x1a6   : > { %s4432_s13 = sld [smem:[#allocation72_spill]] }
 0x1a7   : > { %s4353_s19 = sshll.u32 %s4261_s1, 3 }
 0x1a8   : > { %2465 = vmatmul.msk.bf16.vlgmr.msra.gmra.mxu2 %vm1307_vm0, %v1286_v6 }
 0x1a9   : > { %1483 = vmatpush.bf16.msrb.mxu1 %v2585_v45  ;;  %1559 = vmatpush.bf16.msrb.mxu2 %v2588_v3  ;;  %s1276_s12 = scalar_lea.vmem %s4430_s27, %s4353_s19  ;;  %s2006_s27 = sshll.u32 %s4273_s3, 4  ;;  %s2007_s27 = int_to_ptr.vmem [resolvable:$true] %s2006_s27 }
 0x1ad   : > { %1560 = vmatpush.bf16.msrb.mxu2 %v2587_v4  ;;  %v2525_v4 = vld [vmem:[%s4427_s4 + $0xc] sm:$0xf0] }
 0x221   : > { %v1320_v8 = vpop.f32.mrf.mxu0  ;;  %v1353_v9 = vpop.f32.mrf.mxu1 }
 0x222   : > { %v1354_v11 = vadd.f32 %v2864_v7, %v1353_v9  ;;  %v1321_v13 = vadd.f32 %v2863_v10, %v1320_v8 }
 0x224   : > { %v1391_v12 = vpack.c.bf16 %v1354_v11, %v1354_v11  ;;  %v1390_v17 = vpack.c.bf16 %v1321_v13, %v1321_v13 }
 0x226   : > { %v1396_v14 = vsel %vm1307_vm0, %v1391_v12, 0 }
 0x227   : > { %1405 = vmatpush.bf16.xpose.msra.mxu3 %v1396_v14 }
 0x229   : > { %v1322_v15 = vpop.f32.mrf.mxu0  ;;  %v1355_v16 = vpop.f32.mrf.mxu1 }
 0x22a   : > { %v2867_v15 = vld [vmem:[#allocation23] ss:$0 sm:$0xff] }
 0x22b   : > { %v1386_v29 = vpop.f32.mrf.mxu2 }
 0x22c   : > { %v1387_v37 = vadd.f32 %v2865_v36, %v1386_v29  ;;  %v2869_v29 = vld [vmem:[#allocation27] ss:$0 sm:$0xff] }
 0x22e   : > { %2466 = vmatmul.msk.bf16.vlgmr.msra.gmra.mxu3 %vm1307_vm0, %v1390_v17  ;;  %v1431_v38 = vpack.c.bf16 %v1387_v37, %v1387_v37 }
 0x230   : > { %v1437_v39 = vsel %vm1435_vm2, %v1431_v38, 0 }
 0x231   : > { %1446 = vmatpush.bf16.msrb.mxu0 %v1437_v39 }
 0x233   : > { %v1388_v33 = vpop.f32.mrf.mxu2 }
 0x2b1   : > { %v1407_v24 = vpop.f32.mrf.mxu3 }
 0x2b2   : > { %v1411_v25 = vmul.f32 0.17677669, %v1407_v24  ;;  %v2593_v24 = vld [vmem:[%s4426_s23 + $0x20] sm:$0xff] }
 0x2b4   : > { %v1417_v26 = vadd.f32 %v1415_v23, %v1411_v25  ;;  %v2594_v23 = vld [vmem:[%s4426_s23 + $0x28] sm:$0xff]  ;;  %v2592_v25 = vld [vmem:[%s4426_s23 + $0x18] sm:$0xff] }
 0x2b6   : > { %v1419_v27 = vsel %vm1418_vm1, %v1417_v26, -inf }
 0x2b7   : > { %1420 = vmax.xlane.f32.xlu0 %v1419_v27  ;;  %v2590_v27 = vld [vmem:[%s4426_s23 + $0x8] sm:$0xff] }
 0x2b9   : > { %v1409_v28 = vpop.f32.mrf.mxu3 }
 0x2ba   : > { %v2589_v28 = vld [vmem:[%s4426_s23] sm:$0xff] }
 0x32a   : > { %v1421_v30 = vpop.xlane.xlu0 %1420 }
 0x32b   : > { %v1422_v31 = vsub.f32 %v1417_v26, %v1421_v30  ;;  %v2591_v26 = vld [vmem:[%s4426_s23 + $0x10] sm:$0xff] }
 0x32d   : > { %v1423_v32 = vmul.f32 1.442695, %v1422_v31 }
 0x32f   : > { %2874 = vpow2.f32 %v1423_v32 }
 0x335   : > { %v2875_v34 = vpop.eup %2874 }
 0x336   : > { %v1425_v35 = vsel %vm1418_vm1, %v2875_v34, 0.0 }
 0x337   : > { %1426 = vadd.xlane.f32.xlu0 %v1425_v35 }
 0x3aa   : > { %v1427_v41 = vpop.xlane.xlu0 %1426 }
 0x3ab   : > { %2876 = vrcp.f32 %v1427_v41 }
 0x3ac   : > { %2878 = vrcp.f32 %v3658_v55 }
 0x3b1   : > { %v2877_v42 = vpop.eup %2876 }
 0x3b2   : > { %v1429_v43 = vmul.f32 %v2877_v42, %v2875_v34  ;;  %v2879_v56 = vpop.eup %2878 }
 0x3b3   : > { %v1496_v57 = vmul.f32 32.0, %v2879_v56  ;;  %vm1500_vm3 = vweird.f32 %v2879_v56 }
 0x3b4   : > { %v1430_v44 = vpack.c.bf16 %v1429_v43, %v1429_v43  ;;  %v2870_v43 = vld [vmem:[#allocation29] ss:$0 sm:$0xff] }
 0x3b5   : > { %v1497_v58 = vsub.f32 1.0, %v1496_v57  ;;  %v2535_v57 = vld [vmem:[%s4427_s4 + $0x18] sm:$0xf] }
 0x3b6   : > { %2468 = vmatmul.msk.bf16.vlgmr.msrb.gmra.mxu0 %vm1418_vm1, %v1430_v44 }
 0x3b7   : > { %v1498_v59 = vmul.f32 %v2879_v56, %v1497_v58  ;;  %v2601_v58 = vld [vmem:[%s4427_s4 + $0x20] sm:$0xf0] }
 0x3b9   : > { %v1499_v60 = vadd.f32 %v2879_v56, %v1498_v59  ;;  %v2600_v59 = vld [vmem:[%s4427_s4 + $0x1c] sm:$0xf] }
 0x3bb   : > { %v4207_v61 = vsel %vm1500_vm3, %v2879_v56, %v1499_v60  ;;  %v2536_v60 = vor.u32 %v2601_v58, %v2535_v57  ;;  %v1731_v58 = vld [vmem:[%s4429_s21] sm:$0x7] }
 0x3bd   : > { %1779 = vmatpush.bf16.msra.mxu1 %v2536_v60 }
 0x433   : > { %v1448_v46 = vpop.f32.mrf.mxu0 }
 0x434   : > { %v1452_v47 = vpack.c.bf16 %v1448_v46, %v1448_v46 }
 0x436   : > { %2477 = vmatmul.msk.bf16.vlgmr.msrb.gmra.mxu1 %vm1307_vm0, %v1452_v47 }
 0x43b   : > { %v1450_v48 = vpop.f32.mrf.mxu0 }
 0x4b3   : > { %v1485_v50 = vpop.f32.mrf.mxu1 }
 0x4b4   : > { %v1486_v51 = vadd.f32 %v2866_v49, %v1485_v50  ;;  %v1691_v49 = vlaneseq }
 0x4b6   : > { %v1489_v52 = vadd.f32 %v1486_v51, %v4189_v5  ;;  %v2596_v5 = vld [vmem:[%s4426_s23 + $0x38] sm:$0xff]  ;;  %v1695_v50 = vshrl.u32 %v1691_v49, 7  ;;  %v2871_v51 = vld [vmem:[%s1089_s6] ss:$0 sm:$0xff]  ;;  %s4433_s6 = sld [smem:[#allocation73_spill]] }
 0x4b7   : > { %1644 = vmatpush.bf16.msrb.mxu3 %v2596_v5 }
 0x4b8   : > { %v1492_v53 = vsel %vm1307_vm0, %v1489_v52, 0.0  ;;  %2862 = vset.pattern.permute.xlu0 %v1695_v50 }
 0x4b9   : > { %1493 = vadd.xlane.f32.xlu1 %v1492_v53 }
 0x4bb   : > { %v1487_v54 = vpop.f32.mrf.mxu1  ;;  %1645 = vmatpush.bf16.msrb.mxu3 %v2595_v22  ;;  %v2602_v22 = vld [vmem:[%s4427_s4 + $0x28] sm:$0xf0] }
 0x4bc   : > { %s2004_s21 = scalar_lea.hbm %s4433_s6, %s2576_s9  ;;  %s3492_s19 = scalar_lea.hbm %s4433_s6, 8 }
 0x4bf   : > { %1646 = vmatpush.bf16.msrb.mxu3 %v2594_v23 }
 0x4c0   : > { %1698 = vperm.xlu0 %2862, %v2871_v51  }
 0x4c3   : > { %1647 = vmatpush.bf16.msrb.mxu3 %v2593_v24  ;;  %v3659_v24 = vmov 0.0  }
 0x4c7   : > { %1648 = vmatpush.bf16.msrb.mxu3 %v2592_v25 }
 0x4cb   : > { %1649 = vmatpush.bf16.msrb.mxu3 %v2591_v26 }
 0x4cf   : > { %1650 = vmatpush.bf16.msrb.mxu3 %v2590_v27 }
 0x4d3   : > { %1651 = vmatpush.bf16.msrb.mxu3 %v2589_v28  ;;  %v2531_v28 = vld [vmem:[%s4427_s4 + $0x8] sm:$0xf] }
 0x52c   : > { %v1494_v62 = vpop.xlane.xlu1 %1493 }
 0x52d   : > { %v1502_v63 = vmul.f32 %v4207_v61, %v1494_v62  ;;  %v2537_v62 = vld [vmem:[%s4427_s4 + $0x24] sm:$0xf0] }
 0x52f   : > { %v1503_v0 = vsub.f32 %v1489_v52, %v1502_v63  ;;  %v2540_v63 = vor.u32 %v2600_v59, %v2537_v62  ;;  %v1735_v59 = vperm.slane %v1731_v58, 2 }
 0x531   : > { %v1504_v1 = vmul.f32 %v1503_v0, %v1503_v0  ;;  %1792 = vmatpush.bf16.msra.mxu2 %v2540_v63 }
 0x533   : > { %v1505_v2 = vsel %vm1307_vm0, %v1504_v1, 0.0  ;;  %v2598_v1 = vld [vmem:[%s4427_s4 + $0x8] sm:$0xf0] }
 0x534   : > { %1506 = vadd.xlane.f32.xlu1 %v1505_v2  ;;  %v2597_v2 = vld [vmem:[%s4427_s4 + $0x4] sm:$0xf] }
 0x535   : > { %v2528_v5 = vor.u32 %v2597_v2, %v2525_v4  ;;  %v1733_v2 = vperm.slane %v1731_v58, 0 }
 0x537   : > { %1793 = vmatpush.bf16.msra.mxu2 %v2528_v5 }
 0x5a7   : > { %v1507_v6 = vpop.xlane.xlu1 %1506 }
 0x5a8   : > { %v1508_v7 = vmul.f32 %v1507_v6, %v4207_v61 }
 0x5aa   : > { %v1509_v8 = vadd.f32 1e-12, %v1508_v7 }
 0x5ac   : > { %2880 = vrsqrt.f32 %v1509_v8  ;;  %vm1516_vm5 = vweird.f32 %v1509_v8 }
 0x5b2   : > { %v2881_v9 = vpop.eup %2880 }
 0x5b3   : > { %v1511_v10 = vmul.f32 %v2881_v9, %v1509_v8  ;;  %vm1517_vm4 = vweird.f32 %v2881_v9 }
 0x5b4   : > { %vm1518_vm6 = vmor %vm1516_vm5, %vm1517_vm4 }
 0x5b5   : > { %v1512_v11 = vmul.f32 %v2881_v9, %v1511_v10 }
 0x5b7   : > { %v1513_v12 = vmul.f32 0.5, %v1512_v11 }
 0x5b9   : > { %v1514_v13 = vsub.f32 1.5, %v1513_v12 }
 0x5bb   : > { %v1515_v14 = vmul.f32 %v2881_v9, %v1514_v13 }
 0x5bd   : > { %v1519_v16 = vsel %vm1518_vm6, %v2881_v9, %v1515_v14 }
 0x5be   : > { %v1520_v17 = vmul.f32 %v1519_v16, %v1503_v0  ;;  %v2523_v0 = vld [vmem:[%s4427_s4] sm:$0xf]  ;;  %v1692_v16 = vand.u32 127, %v1691_v49 }
 0x5bf   : > { %v2524_v3 = vor.u32 %v2598_v1, %v2523_v0  ;;  %v1821_v0 = vld [vmem:[%s4431_s17] sm:$0x7]  ;;  %s2008_s17 = sshll.u32 %s2004_s21, 4  ;;  %s2009_s17 = int_to_ptr.hbm [resolvable:$true] %s2008_s17 }
 0x5c0   : > { %v1524_v19 = vmul.f32 %v2867_v15, %v1520_v17  ;;  %v2872_v15 = vld [vmem:[#allocation30] ss:$0 sm:$0xff]  ;;  %v1823_v1 = vperm.slane %v1821_v0, 0  ;;  %s3486_s15 = sshra.s32 %s2009_s17, 4  ;;  %s3487_s15 = int_to_ptr.hbm [resolvable:$true] %s3486_s15 }
 0x5c1   : > { %1780 = vmatpush.bf16.msra.mxu1 %v2524_v3  ;;  %p3493_p8 = scmp.lt.s32.totalorder %s3487_s15, %s4433_s6 }
 0x5c2   : > { %v1528_v20 = vadd.f32 %v2868_v18, %v1524_v19  ;;  %v1699_v18 = vpop.permute.xlu0 %1698  ;;  %v2873_v19 = vld [vmem:[#allocation32] ss:$0 sm:$0xff] }
 0x5c3   : > { %vm1700_vm10 = vcmp.eq.s32.totalorder %v1692_v16, %v1699_v18 }
 0x5c4   : > { %v1529_v21 = vpack.c.bf16 %v1528_v20, %v1528_v20  ;;  %v2519_v25 = vsel %vm1700_vm10, 1.0, %v3659_v24 }
 0x5c6   : > { %2486 = vmatmul.msk.bf16.vlgmr.msrb.gmra.mxu2 %vm1307_vm0, %v1529_v21  ;;  %v2543_v21 = vld [vmem:[%s4427_s4 + $0x20] sm:$0xf] }
 0x5c7   : > { %v2544_v27 = vor.u32 %v2602_v22, %v2543_v21 }
 0x649   : > { %v1562_v30 = vpop.f32.mrf.mxu2 }
 0x64a   : > { %v1563_v31 = vadd.f32 %v2869_v29, %v1562_v30  ;;  %v2599_v29 = vld [vmem:[%s4427_s4 + $0x10] sm:$0xf0]  ;;  %v1703_v30 = vpack.c.bf16 %v2519_v25, %v2519_v25 }
 0x64c   : > { %v1566_v32 = vmul.f32 %v1563_v31, %v1563_v31 }
 0x64e   : > { %v1567_v33 = vmul.f32 %v1566_v32, %v1563_v31  ;;  %v2532_v32 = vor.u32 %v2599_v29, %v2531_v28 }
 0x650   : > { %v1568_v34 = vmul.f32 0.044715, %v1567_v33  ;;  %v2562_v33 = vld [vmem:[%s4428_s24 + $0x18] sm:$0xf] }
 0x651   : > { %v1564_v35 = vpop.f32.mrf.mxu2 }
 0x652   : > { %v1569_v36 = vadd.f32 %v1568_v34, %v1563_v31  ;;  %v2607_v34 = vld [vmem:[%s4428_s24 + $0x20] sm:$0xf0]  ;;  %v2606_v35 = vld [vmem:[%s4428_s24 + $0x1c] sm:$0xf] }
 0x654   : > { %v1570_v37 = vmul.f32 0.7978846, %v1569_v36  ;;  %v2563_v36 = vor.u32 %v2607_v34, %v2562_v33 }
 0x656   : > { %2882 = vtanh.f32 %v1570_v37  ;;  %v2564_v37 = vld [vmem:[%s4428_s24 + $0x24] sm:$0xf0]  ;;  %1870 = vmatpush.bf16.msrb.mxu1 %v2563_v36 }
 0x65c   : > { %v2883_v38 = vpop.eup %2882 }
 0x65d   : > { %v1572_v39 = vadd.f32 1.0, %v2883_v38  ;;  %v2570_v38 = vld [vmem:[%s4428_s24 + $0x20] sm:$0xf] }
 0x65f   : > { %v1573_v40 = vmul.f32 0.5, %v1572_v39  ;;  %v2608_v39 = vld [vmem:[%s4428_s24 + $0x28] sm:$0xf0] }
 0x661   : > { %v1574_v41 = vmul.f32 %v1573_v40, %v1563_v31  ;;  %v2567_v40 = vor.u32 %v2606_v35, %v2564_v37 }
 0x663   : > { %v1575_v42 = vpack.c.bf16 %v1574_v41, %v1574_v41  ;;  %v2571_v41 = vor.u32 %v2608_v39, %v2570_v38  ;;  %1883 = vmatpush.bf16.msrb.mxu2 %v2567_v40 }
 0x665   : > { %1652 = vmatmul.bf16.vlgmr.msrb.gmra.mxu3 %v1575_v42  ;;  %v2550_v42 = vld [vmem:[%s4428_s24] sm:$0xf] }
 0x666   : > { %1896 = vmatpush.bf16.msra.mxu3 %v2571_v41 }
 0x6e8   : > { %v1653_v44 = vpop.f32.mrf.mxu3 }
 0x6e9   : > { %v1654_v45 = vadd.f32 %v2870_v43, %v1653_v44  ;;  %v2604_v43 = vld [vmem:[%s4428_s24 + $0x8] sm:$0xf0]  ;;  %v2603_v44 = vld [vmem:[%s4428_s24 + $0x4] sm:$0xf] }
 0x6eb   : > { %v1657_v46 = vadd.f32 %v1654_v45, %v1528_v20  ;;  %v2551_v45 = vor.u32 %v2604_v43, %v2550_v42 }
 0x6ed   : > { %v1660_v47 = vsel %vm1307_vm0, %v1657_v46, 0.0  ;;  %1871 = vmatpush.bf16.msrb.mxu1 %v2551_v45 }
 0x6ee   : > { %1661 = vadd.xlane.f32.xlu2 %v1660_v47  ;;  %v2558_v47 = vld [vmem:[%s4428_s24 + $0x8] sm:$0xf] }
 0x6f0   : > { %v1655_v48 = vpop.f32.mrf.mxu3 }
 0x6f1   : > { %v2605_v48 = vld [vmem:[%s4428_s24 + $0x10] sm:$0xf0] }
 0x6f2   : > { %v2559_v50 = vor.u32 %v2605_v48, %v2558_v47 }
 0x6f4   : > { %1897 = vmatpush.bf16.msra.mxu3 %v2559_v50 }
 0x761   : > { %v1662_v52 = vpop.xlane.xlu2 %1661 }
 0x762   : > { %v1663_v53 = vmul.f32 %v1662_v52, %v4207_v61 }
 0x764   : > { %v1664_v54 = vsub.f32 %v1657_v46, %v1663_v53  ;;  %v2552_v46 = vld [vmem:[%s4428_s24 + $0xc] sm:$0xf0] }
 0x765   : > { %v2555_v49 = vor.u32 %v2603_v44, %v2552_v46 }
 0x766   : > { %v1665_v55 = vmul.f32 %v1664_v54, %v1664_v54 }
 0x767   : > { %1884 = vmatpush.bf16.msrb.mxu2 %v2555_v49 }
 0x768   : > { %v1666_v56 = vsel %vm1307_vm0, %v1665_v55, 0.0 }
 0x769   : > { %1667 = vadd.xlane.f32.xlu2 %v1666_v56 }
 0x7dc   : > { %v1668_v6 = vpop.xlane.xlu2 %1667 }
 0x7dd   : > { %v1669_v7 = vmul.f32 %v1668_v6, %v4207_v61 }
 0x7df   : > { %v1670_v8 = vadd.f32 1e-12, %v1669_v7 }
 0x7e1   : > { %2884 = vrsqrt.f32 %v1670_v8  ;;  %vm1677_vm8 = vweird.f32 %v1670_v8 }
 0x7e7   : > { %v2885_v9 = vpop.eup %2884 }
 0x7e8   : > { %v1672_v10 = vmul.f32 %v2885_v9, %v1670_v8  ;;  %vm1678_vm7 = vweird.f32 %v2885_v9 }
 0x7e9   : > { %vm1679_vm9 = vmor %vm1677_vm8, %vm1678_vm7 }
 0x7ea   : > { %v1673_v11 = vmul.f32 %v2885_v9, %v1672_v10  ;;  %v1734_v10 = vperm.slane %v1731_v58, 1 }
 0x7ec   : > { %v1674_v12 = vmul.f32 0.5, %v1673_v11 }
 0x7ee   : > { %v1675_v13 = vsub.f32 1.5, %v1674_v12  ;;  %v1825_v12 = vperm.slane %v1821_v0, 2 }
 0x7f0   : > { %v1676_v14 = vmul.f32 %v2885_v9, %v1675_v13 }
 0x7f2   : > { %v1680_v17 = vsel %vm1679_vm9, %v2885_v9, %v1676_v14  ;;  %v1824_v9 = vperm.slane %v1821_v0, 1 }
 0x7f3   : > { %v1681_v61 = vmul.f32 %v1680_v17, %v1664_v54 }
 0x7f5   : > { %v1685_v20 = vmul.f32 %v2872_v15, %v1681_v61 }
 0x7f7   : > { %v1689_v23 = vadd.f32 %v2873_v19, %v1685_v20 }
 0x7f9   : > { %v1690_v26 = vpack.c.bf16 %v1689_v23, %v1689_v23 }
 0x7fb   : > { %2545 = vmatmul.msk.bf16.vlgmr.msra.gmra.mxu1 %vm1307_vm0, %v1690_v26  ;;  %2546 = vmatmul.msk.bf16.vlgmr.msra.gmra.mxu2 %vm1307_vm0, %v1690_v26  ;;  %v1708_v31 = vsel %vm1435_vm2, %v1690_v26, 0 }
 0x7fc   : > { %1717 = vmatpush.bf16.msra.mxu0 %v1708_v31 }
 0x7ff   : > { %2520 = vmatmul.msk.bf16.vlgmr.msra.gmra.mxu0 %vm1418_vm1, %v1703_v30  ;;  %v1913_v30 = vld [vmem:[%s4432_s13] sm:$0x3]  ;;  %s3488_s13 = scalar_lea.hbm %s3487_s15, 4 }
 0x800   : > { %1805 = vmatpush.bf16.msrb.mxu0 %v2544_v27  ;;  %v1921_v35 = vperm.slane %v1913_v30, 0  ;;  %v1922_v36 = vperm.slane %v1913_v30, 1  ;;  %p3489_p7 = scmp.ne.s32.totalorder %s3487_s15, %s3488_s13  ;;  %p3494_p1 = scmp.lt.s32.totalorder %s3492_s19, %s3488_s13 }
 0x802   : > { %p3490_p2 = pnand %p3489_p7, %p3982_p5  ;;  %p3495_p11 = por %p3494_p1, %p3493_p8 }
 0x804   : > { %1806 = vmatpush.bf16.msrb.mxu0 %v2532_v32  ;;  %p3491_p9 = pneg %p3490_p2 }
 0x806   : > { %p3496_p13 = pnand %p3495_p11, %p3491_p9 }
 0x80f   : > { %2547 = vmatmul.msk.bf16.vlgmr.msrb.gmra.mxu0 %vm1307_vm0, %v1690_v26 }
 0x878   : > { %v1782_v51 = vpop.f32.mrf.mxu1 }
 0x879   : > { %v1783_v5 = vadd.f32 %v1782_v51, %v1733_v2 }
 0x87c   : > { %v1719_v52 = vpop.f32.mrf.mxu0 }
 0x87d   : > { %v1812_v53 = vpack.c.bf16 %v1719_v52, %v1719_v52 }
 0x87e   : > { %v1795_v54 = vpop.f32.mrf.mxu2 }
 0x87f   : > { %2572 = vmatmul.msk.bf16.vlgmr.msrb.gmra.mxu1 %vm1307_vm0, %v1812_v53  ;;  %2573 = vmatmul.msk.bf16.vlgmr.msrb.gmra.mxu2 %vm1307_vm0, %v1812_v53  ;;  %v1796_v61 = vadd.f32 %v1795_v54, %v1734_v10 }
 0x880   : > { %v1784_v55 = vpop.f32.mrf.mxu1  ;;  %2574 = vmatmul.msk.bf16.vlgmr.msra.gmra.mxu3 %vm1307_vm0, %v1812_v53 }
 0x881   : > { %v1969_v55 = vld [vmem:[#allocation2] sm:$0x1] }
 0x882   : > { %2609 = vpush %v1969_v55 }
 0x884   : > { %v1721_v56 = vpop.f32.mrf.mxu0 }
 0x886   : > { %v1797_v57 = vpop.f32.mrf.mxu2 }
 0x88c   : > { %v1808_v60 = vpop.f32.mrf.mxu0 }
 0x88d   : > { %v4268_v62 = vadd.f32 %v1808_v60, %v1735_v59 }
 0x88f   : > { %1904 = vst.msk [vmem:[%s1276_s12] sm:$0xff] %vm1903_vm11, %v4268_v62  ;;  %s1982_s12 = scalar_lea.sflag [#allocation5], %s4134_s14 }
 0x894   : > { %v1810_v63 = vpop.f32.mrf.mxu0 }
 0x8fc   : > { %v1873_v3 = vpop.f32.mrf.mxu1 }
 0x8fd   : > { %v1874_v4 = vadd.f32 %v1873_v3, %v1823_v1 }
 0x8ff   : > { %v1914_v6 = vperm.slane %v1874_v4, 0  ;;  %v1930_v7 = vperm.slane %v1874_v4, 1  ;;  %v1952_v8 = vperm.slane %v1874_v4, 3  ;;  %v1941_v11 = vperm.slane %v1874_v4, 2 }
 0x901   : > { %v1932_v13 = vadd.f32 %v1930_v7, %v1783_v5  ;;  %v1916_v14 = vadd.f32 %v1914_v6, %v1783_v5  ;;  %v1954_v16 = vadd.f32 %v1952_v8, %v1783_v5  ;;  %v1943_v19 = vadd.f32 %v1941_v11, %v1783_v5 }
 0x902   : > { %v1886_v15 = vpop.f32.mrf.mxu2 }
 0x903   : > { %v1887_v17 = vadd.f32 %v1886_v15, %v1824_v9  ;;  %v1899_v18 = vpop.f32.mrf.mxu3  ;;  %2886 = vtanh.f32 %v1932_v13 }
 0x904   : > { %v1900_v20 = vadd.f32 %v1899_v18, %v1825_v12  ;;  %v1875_v21 = vpop.f32.mrf.mxu1  ;;  %2888 = vtanh.f32 %v1916_v14 }
 0x905   : > { %v1915_v22 = vperm.slane %v1887_v17, 0  ;;  %v1931_v23 = vperm.slane %v1887_v17, 1  ;;  %v1942_v24 = vperm.slane %v1887_v17, 2  ;;  %v1953_v25 = vperm.slane %v1887_v17, 3 }
 0x906   : > { %1912 = vst.msk [vmem:[%s4273_s3] sm:$0xf] %vm1911_vm12, %v1900_v20  ;;  %2890 = vtanh.f32 %v1954_v16 }
 0x907   : > { %v1917_v26 = vadd.f32 %v1915_v22, %v1796_v61  ;;  %v1933_v27 = vadd.f32 %v1931_v23, %v1796_v61  ;;  %v1955_v28 = vadd.f32 %v1953_v25, %v1796_v61  ;;  %v1944_v29 = vadd.f32 %v1942_v24, %v1796_v61 }
 0x908   : > { %2892 = vtanh.f32 %v1943_v19 }
 0x909   : > { %2894 = vtanh.f32 %v1933_v27  ;;  %v2887_v31 = vpop.eup %2886 }
 0x90a   : > { %v1888_v32 = vpop.f32.mrf.mxu2  ;;  %2896 = vtanh.f32 %v1917_v26  ;;  %v2889_v34 = vpop.eup %2888  ;;  %v1936_v41 = vmul.f32 %v2887_v31, %v1921_v35 }
 0x90b   : > { %v1901_v33 = vpop.f32.mrf.mxu3  ;;  %2898 = vtanh.f32 %v1955_v28  ;;  %v1925_v44 = vmul.f32 %v2889_v34, %v1921_v35 }
 0x90c   : > { %2900 = vtanh.f32 %v1944_v29  ;;  %v2891_v37 = vpop.eup %2890 }
 0x90d   : > { %v1958_v48 = vmul.f32 %v2891_v37, %v1921_v35 }
 0x90e   : > { %v2893_v38 = vpop.eup %2892 }
 0x90f   : > { %v2895_v39 = vpop.eup %2894  ;;  %v1947_v51 = vmul.f32 %v2893_v38, %v1921_v35 }
 0x910   : > { %v2897_v40 = vpop.eup %2896  ;;  %v1937_v42 = vmul.f32 %v2895_v39, %v1922_v36 }
 0x911   : > { %v2899_v43 = vpop.eup %2898  ;;  %v1926_v45 = vmul.f32 %v2897_v40, %v1922_v36 }
 0x912   : > { %v2901_v46 = vpop.eup %2900  ;;  %v1938_v47 = vadd.f32 %v1937_v42, %v1936_v41  ;;  %v1959_v49 = vmul.f32 %v2899_v43, %v1922_v36 }
 0x913   : > { %v1927_v50 = vadd.f32 %v1926_v45, %v1925_v44  ;;  %v1948_v52 = vmul.f32 %v2901_v46, %v1922_v36 }
 0x914   : > { %1939 = vadd.xlane.f32.xlu2 %v1938_v47  ;;  %v1960_v53 = vadd.f32 %v1959_v49, %v1958_v48 }
 0x915   : > { %1928 = vadd.xlane.f32.xlu1 %v1927_v50  ;;  %v1949_v54 = vadd.f32 %v1948_v52, %v1947_v51 }
 0x91c   : > { %1961 = vadd.xlane.f32.xlu2 %v1960_v53 }
 0x91d   : > { %1950 = vadd.xlane.f32.xlu1 %v1949_v54 }
 0x91e   : > { %3499 = shalt.err (!%p3496_p13)
}
 0x91f   : > { %2679 = dma.vmem_to_hbm [thread:$0]  (%p3982_p5), %s2007_s27, 64, %s2009_s17, %s1982_s12   ;;  %v1285_v56 = vld [vmem:[%s1098_s26] sm:$0x1]  ;;  %vm1963_vm13 = vcmask 7168   ;;  %vm1965_vm14 = vcmask 15360   ;;  %vm1967_vm15 = vcmask 23552  }
 0x920   : > { %s3660_s3 = smov 121   ;;  %s4434_s9 = sld [smem:[#allocation76_spill]]  ;;  %v1973_v59 = vsub.f32 1.0, %v1285_v56  ;;  %vm1979_vm0 = vcmask 31744   ;;  %vm1909_vm1 = vcmask 16384  }
 0x921   : > { %s2610_s21 = spop %2609  ;;  %s4435_s19 = sld [smem:[#allocation74_spill]] }
 0x922   : > { %v1974_v60 = vmul.f32 1e+10, %v1973_v59  ;;  %v1971_v2 = vstv %s2610_s21  ;;  %s4436_s26 = sshll.u32 %s4261_s1, 3  ;;  %s1260_s12 = scalar_lea.vmem [#allocation34], %s4134_s14 }
 0x923   : > { %s2019_s15 = sshll.u32 %s1260_s12, 4  ;;  %s2020_s15 = int_to_ptr.vmem [resolvable:$true] %s2019_s15 }
 0x924   : > { %v1976_v3 = vperm.slane %v1974_v60, 0 }
 0x926   : > { %s1280_s27 = scalar_lea.vmem %s4434_s9, %s4436_s26 }
 0x927   : > { %s2017_s17 = scalar_lea.hbm %s4435_s19, %s3838_s16  ;;  %s3520_s9 = scalar_lea.hbm %s4435_s19, 2 }
 0x928   : > { %s2021_s13 = sshll.u32 %s2017_s17, 4  ;;  %s2022_s13 = int_to_ptr.hbm [resolvable:$true] %s2021_s13 }
 0x929   : > { %s3514_s21 = sshra.s32 %s2022_s13, 4  ;;  %s3515_s21 = int_to_ptr.hbm [resolvable:$true] %s3514_s21 }
 0x92a   : > { %s3516_s1 = scalar_lea.hbm %s3515_s21, 1  ;;  %p3521_p0 = scmp.lt.s32.totalorder %s3515_s21, %s4435_s19 }
 0x92b   : > { %p3517_p10 = scmp.ne.s32.totalorder %s3515_s21, %s3516_s1  ;;  %p3522_p4 = scmp.lt.s32.totalorder %s3520_s9, %s3516_s1 }
 0x92d   : > { %p3518_p12 = pnand %p3517_p10, %p3982_p5  ;;  %p3523_p7 = por %p3522_p4, %p3521_p0 }
 0x92f   : > { %p3519_p6 = pneg %p3518_p12 }
 0x931   : > { %p3524_p2 = pnand %p3523_p7, %p3519_p6 }
 0x936   : > { %1906 = vrot.lane.b32.xlu1 %v4268_v62, %s3660_s3  ;;  %s1987_s3 = scalar_lea.sflag [#allocation35], %s4134_s14 }
 0x987   : > { %v1940_v57 = vpop.xlane.xlu2 %1939 }
 0x988   : > { %v1929_v58 = vpop.xlane.xlu1 %1928 }
 0x989   : > { %v1964_v0 = vsel %vm1963_vm13, %v1929_v58, %v1940_v57 }
 0x98f   : > { %v1962_v63 = vpop.xlane.xlu2 %1961 }
 0x990   : > { %v1951_v1 = vpop.xlane.xlu1 %1950 }
 0x991   : > { %v1966_v62 = vsel %vm1965_vm14, %v1964_v0, %v1951_v1 }
 0x992   : > { %v1968_v4 = vsel %vm1967_vm15, %v1966_v62, %v1962_v63 }
 0x993   : > { %v1972_v5 = vadd.f32 %v1971_v2, %v1968_v4 }
 0x995   : > { %v1978_v6 = vsub.f32 %v1972_v5, %v1976_v3 }
 0x997   : > { %1980 = vst.msk [vmem:[%s1280_s27] sm:$0xff] %vm1979_vm0, %v1978_v6 }
 0x9a8   : > { %v1907_v7 = vpop.permute.xlu1 %1906 }
 0x9a9   : > { %1910 = vst.msk [vmem:[%s1260_s12] sm:$0x1] %vm1909_vm1, %v1907_v7 }
 0x9aa   : > { %3527 = shalt.err (!%p3524_p2)
}
 0x9ab   : > { %2680 = dma.vmem_to_hbm [thread:$0]  (%p3982_p5), %s2020_s15, 16, %s2022_s13, %s1987_s3  }
 0x9ac PF: > { %s2039_s16 = sand.u32 1, %s3598_s0   ;;  %p4437_p9 = scmp.ge.s32.totalorder %s3610_s7, 2 }
 0x9ad   : > { %s2040_s14 = scalar_lea.sflag [#allocation5], %s2039_s16 }
 0x9ae   : > { %p2743_p8 = pnand %p4437_p9, %p3986_p3 }
 0x9b0   : > { %p2744_p1 = pneg %p2743_p8 }
 0x9b2   : > { %3589 = dma.done.wait (%p2744_p1), %s2040_s14, 64  }
 0x9b3   : > { %3591 = vsyncadd (%p2744_p1), %s2040_s14, 4294967232  ;;  %s2050_s26 = scalar_lea.sflag [#allocation35], %s2039_s16 }
 0x9b4   : > { %3593 = dma.done.wait (%p2744_p1), %s2050_s26, 16  }
 0x9b5   : > { %3595 = vsyncadd (%p2744_p1), %s2050_s26, 4294967280  ;;  %p91_p5 = scmp.ge.s32.totalorder %s3958_s28, 4   ;;  %s4438_s0 = smov %s3602_s5 }
 0x9b6   : > { %s4439_s5 = smov %s3606_s10  ;;  %s4440_s10 = smov %s3969_s18 }
 0x9b7   : > { %s4441_s7 = smov %s3958_s28  ;;  %93 = sbr.rel (!%p91_p5) target bundleno = 83 (0x53), region = 336 }
 0x9bc   :  { %2069 = vsyncpa [#allocation4], 1 }
 0x9bd   :  { %2071 = vsyncpa [#allocation4 + $0x1], 1 }
 0x9be   :  { %2072 = vsyncpa [#allocation7], 1 }
 0x9bf   :  { %2074 = vsyncpa [#allocation7 + $0x1], 1 }
 0x9c0   :  { %2075 = vsyncpa [#allocation10], 1 }
 0x9c1   :  { %2077 = vsyncpa [#allocation10 + $0x1], 1 }
 0x9c2   :  { %2078 = vsyncpa [#allocation13], 1 }
 0x9c3   :  { %2079 = vsyncpa [#allocation16], 1 }
 0x9c4   :  { %2080 = vsyncpa [#allocation19], 1 }
 0x9c5   :  { %2081 = vsyncpa [#allocation22], 1 }
 0x9c6   :  { %2082 = vsyncpa [#allocation25], 1 }
 0x9c7   :  { %2083 = vsyncpa [#allocation28], 1 }
 0x9c8   :  { %2084 = vsyncpa [#allocation31], 1 }
 0x9c9   :  { %2085 = vsyncpa [#allocation5], 1 }
 0x9ca   :  { %2087 = vsyncpa [#allocation5 + $0x1], 1 }
 0x9cb   :  { %2088 = vsyncpa [#allocation35], 1 }
 0x9cc   :  { %2090 = vsyncpa [#allocation35 + $0x1], 1 }

</bundles_post_ra>
